<compile_context>
chip_gen: v5e
topology: v5e:2x2
jax: 0.10.0
libtpu: 0.0.40
codegen_flags: <defaults>
</compile_context>

<pallas_src>
import functools

import jax
import jax.numpy as jnp
from jax.experimental import pallas as pl
from jax.experimental.pallas import tpu as pltpu

INPUT_SIZE = 28 * 28  # MNIST 28x28 -> 784
HIDDEN = 50
LATENT = 2


def ae_kernel(x_ref,
              w1, b1, w2, b2, w34, b34, w5, b5, w6, b6,
              o_ref):
    cdt = w1.dtype  # compute dtype for MXU operands (bf16 or f32)
    # Cast the streamed x tile to the compute dtype *inside* the kernel: the
    # HBM x stream stays f32, no wrapper-side convert round-trips through HBM.
    x = x_ref[...].astype(cdt)
    # encoder
    h = jnp.tanh(jnp.dot(x, w1[...], preferred_element_type=jnp.float32) + b1[...])
    h = jnp.tanh(jnp.dot(h.astype(cdt), w2[...], preferred_element_type=jnp.float32) + b2[...])
    # l3 (50->2) and l4 (2->50) fused offline into a single 50x50 layer
    h = jnp.tanh(jnp.dot(h.astype(cdt), w34[...], preferred_element_type=jnp.float32) + b34[...])
    # decoder
    h = jnp.tanh(jnp.dot(h.astype(cdt), w5[...], preferred_element_type=jnp.float32) + b5[...])
    y = jnp.dot(h.astype(cdt), w6[...], preferred_element_type=jnp.float32) + b6[...]  # no final act
    o_ref[...] = y.astype(o_ref.dtype)


def prepare_params(params, compute_dtype=jnp.bfloat16):
    """One-time parameter prep. Call when params change, NOT per forward.

    Fuses l3 (50->2) and l4 (2->50) -- no nonlinearity between them -- into a
    single 50x50 layer (W34 = W3 @ W4, b34 = b3 @ W4 + b4), casts weights to
    the MXU compute dtype and keeps biases f32 (added onto the f32 MXU
    accumulator).  Returns flat tuple (w1,b1,w2,b2,w34,b34,w5,b5,w6,b6).
    """
    w1, b1, w2, b2, w3, b3, w4, b4, w5, b5, w6, b6 = params
    w34 = jnp.dot(w3, w4, precision=jax.lax.Precision.HIGHEST)        # (50, 50)
    b34 = jnp.dot(b3, w4, precision=jax.lax.Precision.HIGHEST) + b4   # (1, 50)
    ws = [w1, w2, w34, w5, w6]
    bs = [b1, b2, b34, b5, b6]
    flat = []
    for w, b in zip(ws, bs):
        flat.append(w.astype(compute_dtype))
        flat.append(b.astype(jnp.float32))
    return tuple(flat)


def _choose_batch_tile(B, max_tile):
    """Pick the batch tile tb (multiple of 8, or == B for tiny batches).

    Preference order (candidates are >= max_tile//2 or an exact halving of B,
    so the "divides B" preference can never pick a pathologically small tile):
      1. tiles that split B exactly (no padded rows wasted in the last block),
      2. an even number of grid steps (balanced across v7x's 2 TensorCores),
      3. the largest tile (amortizes ~0.35us per-grid-step overhead).
    """
    max_tile = max(8, int(max_tile))
    if B <= 8 or (B <= max_tile and B % 8 != 0):
        return B  # single full-array tile (block dim == array dim is legal)
    hi = (min(max_tile, B) // 8) * 8
    lo = min(hi, max(8, ((max_tile // 2) // 8) * 8))
    cands = set(range(lo, hi + 1, 8))
    if B <= max_tile:
        cands.add(B)                                   # 1-step option
        half = ((-(-B // 2)) + 7) // 8 * 8             # 2-step option (megacore)
        if half <= max_tile:
            cands.add(half)

    def key(tb):
        g = -(-B // tb)
        return (B % tb == 0, g % 2 == 0, tb)

    return max(cands, key=key)


@functools.partial(jax.jit, static_argnames=("tile_b",))
def ae_forward(x, prepared, *, tile_b=1024):
    """x: (B, INPUT_SIZE) float32. prepared: output of prepare_params()."""
    B, F = x.shape
    assert F == INPUT_SIZE
    flat = list(prepared)
    out_dtype = flat[0].dtype  # emit output in the compute dtype (halves writeback)

    tb = _choose_batch_tile(B, tile_b)
    grid = (pl.cdiv(B, tb),)

    x_spec = pl.BlockSpec((tb, F), lambda i: (i, 0))
    o_spec = pl.BlockSpec((tb, F), lambda i: (i, 0))
    # Weights/biases: full-array blocks with a constant index_map -> DMA'd once,
    # VMEM-resident across every batch tile.
    w_specs = [pl.BlockSpec(a.shape, lambda i: (0, 0)) for a in flat]

    weight_bytes = sum(int(a.size) * a.dtype.itemsize for a in flat)
    cost = pl.CostEstimate(
        flops=2 * B * (F * HIDDEN + 3 * HIDDEN * HIDDEN + HIDDEN * F),
        transcendentals=4 * B * HIDDEN,
        bytes_accessed=(B * F * x.dtype.itemsize                  # f32 x stream in
                        + B * F * jnp.dtype(out_dtype).itemsize   # y stream out
                        + weight_bytes),
    )

    return pl.pallas_call(
        ae_kernel,
        out_shape=jax.ShapeDtypeStruct((B, F), out_dtype),
        grid=grid,
        in_specs=[x_spec] + w_specs,
        out_specs=o_spec,
        compiler_params=pltpu.CompilerParams(
            dimension_semantics=("parallel",),       # megacore-shard the batch axis
            vmem_limit_bytes=32 * 1024 * 1024,       # headroom for 1024-row f32 tiles
        ),
        cost_estimate=cost,
    )(x, *flat)


def init_linear(key, fan_in, fan_out):
    """Mimics torch.nn.Linear default init (uniform +/- 1/sqrt(fan_in)).

    Weight returned pre-transposed to (fan_in, fan_out); bias as (1, fan_out).
    """
    kw, kb = jax.random.split(key)
    bound = 1.0 / jnp.sqrt(jnp.float32(fan_in))
    w = jax.random.uniform(kw, (fan_in, fan_out), jnp.float32, -bound, bound)
    b = jax.random.uniform(kb, (1, fan_out), jnp.float32, -bound, bound)
    return w, b


def make_params(key):
    dims = [(INPUT_SIZE, HIDDEN), (HIDDEN, HIDDEN), (HIDDEN, LATENT),
            (LATENT, HIDDEN), (HIDDEN, HIDDEN), (HIDDEN, INPUT_SIZE)]
    keys = jax.random.split(key, len(dims))
    params = []
    for k, (fi, fo) in zip(keys, dims):
        w, b = init_linear(k, fi, fo)
        params.extend([w, b])
    return params


def ae_reference(x, params):
    """Pure-JAX reference matching the PyTorch forward semantics (unfused)."""
    w1, b1, w2, b2, w3, b3, w4, b4, w5, b5, w6, b6 = params
    h = jnp.tanh(x @ w1 + b1)
    h = jnp.tanh(h @ w2 + b2)
    z = h @ w3 + b3
    h = jnp.tanh(z @ w4 + b4)
    h = jnp.tanh(h @ w5 + b5)
    return h @ w6 + b6


if __name__ == "__main__":
    key = jax.random.PRNGKey(0)
    k_params, k_x = jax.random.split(key)

    params = make_params(k_params)

    # Small batch; the adaptive tile picker still produces grid=(2,) so the
    # multi-tile / megacore path is exercised.
    B = 256
    # MNIST images normalized to [-1, 1] then flattened to (B, 784)
    x = jax.random.uniform(k_x, (B, INPUT_SIZE), jnp.float32, -1.0, 1.0)

    # One-time parameter prep, hoisted out of the per-call path.
    prep_bf16 = prepare_params(params, jnp.bfloat16)
    prep_f32 = prepare_params(params, jnp.float32)

    # Default (bf16 weights/compute, f32 accumulation, f32 x stream) path.
    out_bf16 = jax.block_until_ready(ae_forward(x, prep_bf16))
    # Full-f32 compute path (exact semantics modulo the l3/l4 fusion reassoc).
    out_f32 = jax.block_until_ready(ae_forward(x, prep_f32))

    ref = ae_reference(x, params)

    assert out_bf16.shape == (B, INPUT_SIZE)
    assert out_f32.shape == (B, INPUT_SIZE)
    assert jnp.allclose(out_f32, ref, atol=1e-2, rtol=1e-2), "f32 path mismatch vs reference"
    assert jnp.allclose(out_bf16.astype(jnp.float32), ref, atol=6e-2, rtol=6e-2), \
        "bf16 path mismatch vs reference"

    print("KERNEL_OK")
</pallas_src>

<mosaic_0001>
module attributes {stable_mosaic.version = 11 : i64} {
  func.func @ae_kernel(%arg0: i32, %arg1: memref<128x784xf32, #tpu.memory_space<vmem>>, %arg2: memref<784x50xbf16, #tpu.memory_space<vmem>>, %arg3: memref<1x50xf32, #tpu.memory_space<vmem>>, %arg4: memref<50x50xbf16, #tpu.memory_space<vmem>>, %arg5: memref<1x50xf32, #tpu.memory_space<vmem>>, %arg6: memref<50x50xbf16, #tpu.memory_space<vmem>>, %arg7: memref<1x50xf32, #tpu.memory_space<vmem>>, %arg8: memref<50x50xbf16, #tpu.memory_space<vmem>>, %arg9: memref<1x50xf32, #tpu.memory_space<vmem>>, %arg10: memref<50x784xbf16, #tpu.memory_space<vmem>>, %arg11: memref<1x784xf32, #tpu.memory_space<vmem>>, %arg12: memref<128x784xbf16, #tpu.memory_space<vmem>>) attributes {dimension_semantics = [#tpu.dimension_semantics<parallel>], iteration_bounds = array<i64: 2>, scalar_prefetch = 0 : i64, scratch_operands = 0 : i64, tpu.core_type = #tpu.core_type<tc>, window_params = [{transform_indices = @transform_0, window_bounds = array<i64: 128, 784>}, {pipeline_mode = #tpu.pipeline_mode<synchronous>, transform_indices = @transform_1, window_bounds = array<i64: 784, 50>}, {pipeline_mode = #tpu.pipeline_mode<synchronous>, transform_indices = @transform_2, window_bounds = array<i64: 1, 50>}, {pipeline_mode = #tpu.pipeline_mode<synchronous>, transform_indices = @transform_3, window_bounds = array<i64: 50, 50>}, {pipeline_mode = #tpu.pipeline_mode<synchronous>, transform_indices = @transform_4, window_bounds = array<i64: 1, 50>}, {pipeline_mode = #tpu.pipeline_mode<synchronous>, transform_indices = @transform_5, window_bounds = array<i64: 50, 50>}, {pipeline_mode = #tpu.pipeline_mode<synchronous>, transform_indices = @transform_6, window_bounds = array<i64: 1, 50>}, {pipeline_mode = #tpu.pipeline_mode<synchronous>, transform_indices = @transform_7, window_bounds = array<i64: 50, 50>}, {pipeline_mode = #tpu.pipeline_mode<synchronous>, transform_indices = @transform_8, window_bounds = array<i64: 1, 50>}, {pipeline_mode = #tpu.pipeline_mode<synchronous>, transform_indices = @transform_9, window_bounds = array<i64: 50, 784>}, {pipeline_mode = #tpu.pipeline_mode<synchronous>, transform_indices = @transform_10, window_bounds = array<i64: 1, 784>}, {transform_indices = @transform_11, window_bounds = array<i64: 128, 784>}]} {
    %c0 = arith.constant 0 : index
    %c0_0 = arith.constant 0 : index
    %0 = vector.load %arg1[%c0, %c0_0] : memref<128x784xf32, #tpu.memory_space<vmem>>, vector<128x784xf32>
    %1 = arith.truncf %0 : vector<128x784xf32> to vector<128x784xbf16>
    %c0_1 = arith.constant 0 : index
    %c0_2 = arith.constant 0 : index
    %2 = vector.load %arg2[%c0_1, %c0_2] : memref<784x50xbf16, #tpu.memory_space<vmem>>, vector<784x50xbf16>
    %cst = arith.constant dense<0.000000e+00> : vector<128x50xf32>
    %3 = tpu.matmul %1, %2, %cst {dimension_numbers = #tpu.dot_dimension_numbers<[1], [0], [0], [1], [0, 0, 1, 1], [], []>} : vector<128x784xbf16>, vector<784x50xbf16>, vector<128x50xf32> -> vector<128x50xf32>
    %c0_3 = arith.constant 0 : index
    %c0_4 = arith.constant 0 : index
    %4 = vector.load %arg3[%c0_3, %c0_4] : memref<1x50xf32, #tpu.memory_space<vmem>>, vector<1x50xf32>
    %5 = vector.broadcast %4 : vector<1x50xf32> to vector<128x50xf32>
    %6 = arith.addf %3, %5 : vector<128x50xf32>
    %7 = math.tanh %6 : vector<128x50xf32>
    %8 = arith.truncf %7 : vector<128x50xf32> to vector<128x50xbf16>
    %c0_5 = arith.constant 0 : index
    %c0_6 = arith.constant 0 : index
    %9 = vector.load %arg4[%c0_5, %c0_6] : memref<50x50xbf16, #tpu.memory_space<vmem>>, vector<50x50xbf16>
    %cst_7 = arith.constant dense<0.000000e+00> : vector<128x50xf32>
    %10 = tpu.matmul %8, %9, %cst_7 {dimension_numbers = #tpu.dot_dimension_numbers<[1], [0], [0], [1], [0, 0, 1, 1], [], []>} : vector<128x50xbf16>, vector<50x50xbf16>, vector<128x50xf32> -> vector<128x50xf32>
    %c0_8 = arith.constant 0 : index
    %c0_9 = arith.constant 0 : index
    %11 = vector.load %arg5[%c0_8, %c0_9] : memref<1x50xf32, #tpu.memory_space<vmem>>, vector<1x50xf32>
    %12 = vector.broadcast %11 : vector<1x50xf32> to vector<128x50xf32>
    %13 = arith.addf %10, %12 : vector<128x50xf32>
    %14 = math.tanh %13 : vector<128x50xf32>
    %15 = arith.truncf %14 : vector<128x50xf32> to vector<128x50xbf16>
    %c0_10 = arith.constant 0 : index
    %c0_11 = arith.constant 0 : index
    %16 = vector.load %arg6[%c0_10, %c0_11] : memref<50x50xbf16, #tpu.memory_space<vmem>>, vector<50x50xbf16>
    %cst_12 = arith.constant dense<0.000000e+00> : vector<128x50xf32>
    %17 = tpu.matmul %15, %16, %cst_12 {dimension_numbers = #tpu.dot_dimension_numbers<[1], [0], [0], [1], [0, 0, 1, 1], [], []>} : vector<128x50xbf16>, vector<50x50xbf16>, vector<128x50xf32> -> vector<128x50xf32>
    %c0_13 = arith.constant 0 : index
    %c0_14 = arith.constant 0 : index
    %18 = vector.load %arg7[%c0_13, %c0_14] : memref<1x50xf32, #tpu.memory_space<vmem>>, vector<1x50xf32>
    %19 = vector.broadcast %18 : vector<1x50xf32> to vector<128x50xf32>
    %20 = arith.addf %17, %19 : vector<128x50xf32>
    %21 = math.tanh %20 : vector<128x50xf32>
    %22 = arith.truncf %21 : vector<128x50xf32> to vector<128x50xbf16>
    %c0_15 = arith.constant 0 : index
    %c0_16 = arith.constant 0 : index
    %23 = vector.load %arg8[%c0_15, %c0_16] : memref<50x50xbf16, #tpu.memory_space<vmem>>, vector<50x50xbf16>
    %cst_17 = arith.constant dense<0.000000e+00> : vector<128x50xf32>
    %24 = tpu.matmul %22, %23, %cst_17 {dimension_numbers = #tpu.dot_dimension_numbers<[1], [0], [0], [1], [0, 0, 1, 1], [], []>} : vector<128x50xbf16>, vector<50x50xbf16>, vector<128x50xf32> -> vector<128x50xf32>
    %c0_18 = arith.constant 0 : index
    %c0_19 = arith.constant 0 : index
    %25 = vector.load %arg9[%c0_18, %c0_19] : memref<1x50xf32, #tpu.memory_space<vmem>>, vector<1x50xf32>
    %26 = vector.broadcast %25 : vector<1x50xf32> to vector<128x50xf32>
    %27 = arith.addf %24, %26 : vector<128x50xf32>
    %28 = math.tanh %27 : vector<128x50xf32>
    %29 = arith.truncf %28 : vector<128x50xf32> to vector<128x50xbf16>
    %c0_20 = arith.constant 0 : index
    %c0_21 = arith.constant 0 : index
    %30 = vector.load %arg10[%c0_20, %c0_21] : memref<50x784xbf16, #tpu.memory_space<vmem>>, vector<50x784xbf16>
    %cst_22 = arith.constant dense<0.000000e+00> : vector<128x784xf32>
    %31 = tpu.matmul %29, %30, %cst_22 {dimension_numbers = #tpu.dot_dimension_numbers<[1], [0], [0], [1], [0, 0, 1, 1], [], []>} : vector<128x50xbf16>, vector<50x784xbf16>, vector<128x784xf32> -> vector<128x784xf32>
    %c0_23 = arith.constant 0 : index
    %c0_24 = arith.constant 0 : index
    %32 = vector.load %arg11[%c0_23, %c0_24] : memref<1x784xf32, #tpu.memory_space<vmem>>, vector<1x784xf32>
    %33 = vector.broadcast %32 : vector<1x784xf32> to vector<128x784xf32>
    %34 = arith.addf %31, %33 : vector<128x784xf32>
    %35 = arith.truncf %34 : vector<128x784xf32> to vector<128x784xbf16>
    %c0_25 = arith.constant 0 : index
    %c0_26 = arith.constant 0 : index
    %36 = vector.load %arg12[%c0_25, %c0_26] : memref<128x784xbf16, #tpu.memory_space<vmem>>, vector<128x784xbf16>
    tpu.vector_store %arg12[%c0_25, %c0_26], %35 {strides = array<i32>} : memref<128x784xbf16, #tpu.memory_space<vmem>>, vector<128x784xbf16>,
    return
  }
  func.func @transform_0(%arg0: i32) -> (i32, i32) {
    %c0_i32 = arith.constant 0 : i32
    %c0_i32_0 = arith.constant 0 : i32
    return %arg0, %c0_i32 : i32, i32
  }
  func.func @transform_1(%arg0: i32) -> (i32, i32) {
    %c0_i32 = arith.constant 0 : i32
    %c0_i32_0 = arith.constant 0 : i32
    %c0_i32_1 = arith.constant 0 : i32
    return %c0_i32, %c0_i32_0 : i32, i32
  }
  func.func @transform_2(%arg0: i32) -> (i32, i32) {
    %c0_i32 = arith.constant 0 : i32
    %c0_i32_0 = arith.constant 0 : i32
    %c0_i32_1 = arith.constant 0 : i32
    return %c0_i32, %c0_i32_0 : i32, i32
  }
  func.func @transform_3(%arg0: i32) -> (i32, i32) {
    %c0_i32 = arith.constant 0 : i32
    %c0_i32_0 = arith.constant 0 : i32
    %c0_i32_1 = arith.constant 0 : i32
    return %c0_i32, %c0_i32_0 : i32, i32
  }
  func.func @transform_4(%arg0: i32) -> (i32, i32) {
    %c0_i32 = arith.constant 0 : i32
    %c0_i32_0 = arith.constant 0 : i32
    %c0_i32_1 = arith.constant 0 : i32
    return %c0_i32, %c0_i32_0 : i32, i32
  }
  func.func @transform_5(%arg0: i32) -> (i32, i32) {
    %c0_i32 = arith.constant 0 : i32
    %c0_i32_0 = arith.constant 0 : i32
    %c0_i32_1 = arith.constant 0 : i32
    return %c0_i32, %c0_i32_0 : i32, i32
  }
  func.func @transform_6(%arg0: i32) -> (i32, i32) {
    %c0_i32 = arith.constant 0 : i32
    %c0_i32_0 = arith.constant 0 : i32
    %c0_i32_1 = arith.constant 0 : i32
    return %c0_i32, %c0_i32_0 : i32, i32
  }
  func.func @transform_7(%arg0: i32) -> (i32, i32) {
    %c0_i32 = arith.constant 0 : i32
    %c0_i32_0 = arith.constant 0 : i32
    %c0_i32_1 = arith.constant 0 : i32
    return %c0_i32, %c0_i32_0 : i32, i32
  }
  func.func @transform_8(%arg0: i32) -> (i32, i32) {
    %c0_i32 = arith.constant 0 : i32
    %c0_i32_0 = arith.constant 0 : i32
    %c0_i32_1 = arith.constant 0 : i32
    return %c0_i32, %c0_i32_0 : i32, i32
  }
  func.func @transform_9(%arg0: i32) -> (i32, i32) {
    %c0_i32 = arith.constant 0 : i32
    %c0_i32_0 = arith.constant 0 : i32
    %c0_i32_1 = arith.constant 0 : i32
    return %c0_i32, %c0_i32_0 : i32, i32
  }
  func.func @transform_10(%arg0: i32) -> (i32, i32) {
    %c0_i32 = arith.constant 0 : i32
    %c0_i32_0 = arith.constant 0 : i32
    %c0_i32_1 = arith.constant 0 : i32
    return %c0_i32, %c0_i32_0 : i32, i32
  }
  func.func @transform_11(%arg0: i32) -> (i32, i32) {
    %c0_i32 = arith.constant 0 : i32
    %c0_i32_0 = arith.constant 0 : i32
    return %arg0, %c0_i32 : i32, i32
  }
}

</mosaic_0001>

<bundles_post_ra>
// kernel: ae_forward.1
= control target key start
LH: loop header
LB: loop body
LE: loop exit
PB: predicated region body
PF: predicated region fallthrough
CT: control target
= control target key end

     0   :  { %s3223_s17 = smov 0   ;;  %s4253_s0 = inlined_call_operand.vmem [shape: f32[256,784], index: 0, kind: input, shape index: {}]   ;;  %s4254_s1 = inlined_call_operand.vmem [shape: bf16[784,50], index: 1, kind: input, shape index: {}]   ;;  %s4255_s2 = inlined_call_operand.vmem [shape: f32[1,50], index: 2, kind: input, shape index: {}]   ;;  %s4256_s3 = inlined_call_operand.vmem [shape: bf16[50,50], index: 3, kind: input, shape index: {}]   ;;  %s4257_s4 = inlined_call_operand.vmem [shape: f32[1,50], index: 4, kind: input, shape index: {}]   ;;  %s4258_s5 = inlined_call_operand.vmem [shape: bf16[50,50], index: 5, kind: input, shape index: {}]   ;;  %s4259_s6 = inlined_call_operand.vmem [shape: f32[1,50], index: 6, kind: input, shape index: {}]   ;;  %s4260_s7 = inlined_call_operand.vmem [shape: bf16[50,50], index: 7, kind: input, shape index: {}]   ;;  %s4261_s8 = inlined_call_operand.vmem [shape: f32[1,50], index: 8, kind: input, shape index: {}]   ;;  %s4262_s9 = inlined_call_operand.vmem [shape: bf16[50,784], index: 9, kind: input, shape index: {}]   ;;  %s4263_s10 = inlined_call_operand.vmem [shape: f32[1,784], index: 10, kind: input, shape index: {}]   ;;  %s4264_s11 = inlined_call_operand.vmem [shape: bf16[256,784], index: 11, kind: output, shape index: {}]  }
   0x1 LB: > { %s2495_s18 = sadd.s32 4294967295, %s3161_s17   ;;  %p2499_p0 = scmp.ge.s32.totalorder %s3161_s17, 1  ;;  %s3161_s17 = sphi %s3223_s17, %s21_s17  }
   0x2   : > { %p339_p1 = scmp.lt.s32.totalorder %s3161_s17, 3 }
   0x4   : > { %p340_p2 = pnand %p2499_p0, %p339_p1 }
   0x5   : > { %s2500_s25 = sshll.u32 (!%p340_p2), %s2495_s18, 4 }
   0x6   : > { %343 = sbr.rel (%p340_p2) target bundleno = 1180 (0x49c), region = 64  ;;  %p382_p3 = scmp.lt.s32.totalorder (!%p340_p2), %s2500_s25, 31 }
   0xb   : > { %v2917_v0 = vld [vmem:[%s4254_s1 + $0x38] sm:$0xff]  ;;  %v2916_v1 = vld [vmem:[%s4254_s1 + $0x30] sm:$0xff]  ;;  %v2915_v2 = vld [vmem:[%s4254_s1 + $0x28] sm:$0xff]  ;;  %s4266_s25 = smov (!%p382_p3, %s2500_s25), 31  ;;  %vm1409_vm0 = vcmask 1040384   ;;  %vm960_vm1 = vcmask 130048  }
   0xc   : > { %2989 = vmatpush.bf16.msra.mxu1 %v2917_v0  ;;  %2990 = vmatpush.bf16.msra.mxu2 %v2917_v0  ;;  %v2914_v3 = vld [vmem:[%s4254_s1 + $0x20] sm:$0xff]  ;;  %v2913_v4 = vld [vmem:[%s4254_s1 + $0x18] sm:$0xff]  ;;  %v2912_v5 = vld [vmem:[%s4254_s1 + $0x10] sm:$0xff]  ;;  %s3013_s13 = smul.u32 56, %s4266_s25  ;;  %vm1384_vm2 = vcmask 408576   ;;  %vm2375_vm3 = vcmask 125952  }
   0xd   : > { %2991 = vmatpush.bf16.msra.mxu3 %v2917_v0  ;;  %985 = vmatpush.bf16.msra.mxu0 %v2917_v0  ;;  %v2911_v6 = vld [vmem:[%s4254_s1 + $0x8] sm:$0xff]  ;;  %v2910_v7 = vld [vmem:[%s4254_s1] sm:$0xff]  ;;  %v2933_v12 = vld [vmem:[%s4254_s1 + $0xb8] sm:$0xff] }
   0xe   : > { %s3258_s19 = scalar_lea.vmem %s4253_s0, %s3013_s13  ;;  %v2925_v15 = vld [vmem:[%s4254_s1 + $0x78] sm:$0xff]  ;;  %v2932_v22 = vld [vmem:[%s4254_s1 + $0xb0] sm:$0xff]  ;;  %v2931_v27 = vld [vmem:[%s4254_s1 + $0xa8] sm:$0xff]  ;;  %s3014_s13 = smul.u32 28, %s4266_s25 }
   0xf   : > { %v424_v8 = vld [vmem:[%s3258_s19 + $0xe0] sm:$0xff]  ;;  %v431_v9 = vld [vmem:[%s3258_s19 + $0x118] sm:$0xff]  ;;  %v2924_v24 = vld [vmem:[%s4254_s1 + $0x70] sm:$0xff] }
  0x10   : > { %2992 = vmatpush.bf16.msra.mxu1 %v2916_v1  ;;  %2993 = vmatpush.bf16.msra.mxu2 %v2916_v1  ;;  %v452_v10 = vld [vmem:[%s3258_s19 + $0x1c0] sm:$0xff]  ;;  %v459_v11 = vld [vmem:[%s3258_s19 + $0x1f8] sm:$0xff]  ;;  %v522_v17 = vpack.c.bf16 %v431_v9, %v424_v8  ;;  %v2940_v25 = vld [vmem:[%s4254_s1 + $0xf0] sm:$0xff] }
  0x11   : > { %2994 = vmatpush.bf16.msra.mxu3 %v2916_v1  ;;  %986 = vmatpush.bf16.msra.mxu0 %v2916_v1  ;;  %v480_v13 = vld [vmem:[%s3258_s19 + $0x2a0] sm:$0xff]  ;;  %v487_v14 = vld [vmem:[%s3258_s19 + $0x2d8] sm:$0xff]  ;;  %v536_v18 = vpack.c.bf16 %v459_v11, %v452_v10  ;;  %v2948_v28 = vld [vmem:[%s4254_s1 + $0x130] sm:$0xff] }
  0x12   : > { %v2941_v16 = vld [vmem:[%s4254_s1 + $0xf8] sm:$0xff]  ;;  %v550_v19 = vpack.c.bf16 %v487_v14, %v480_v13  ;;  %v396_v20 = vld [vmem:[%s3258_s19] sm:$0xff]  ;;  %v2923_v29 = vld [vmem:[%s4254_s1 + $0x68] sm:$0xff] }
  0x13   : > { %v403_v21 = vld [vmem:[%s3258_s19 + $0x38] sm:$0xff]  ;;  %v2939_v30 = vld [vmem:[%s4254_s1 + $0xe8] sm:$0xff]  ;;  %v2930_v31 = vld [vmem:[%s4254_s1 + $0xa0] sm:$0xff] }
  0x14   : > { %2995 = vmatpush.bf16.msra.mxu1 %v2915_v2  ;;  %2996 = vmatpush.bf16.msra.mxu2 %v2915_v2  ;;  %v2949_v23 = vld [vmem:[%s4254_s1 + $0x138] sm:$0xff]  ;;  %v508_v26 = vpack.c.bf16 %v403_v21, %v396_v20  ;;  %v2947_v32 = vld [vmem:[%s4254_s1 + $0x128] sm:$0xff]  ;;  %v2922_v33 = vld [vmem:[%s4254_s1 + $0x60] sm:$0xff] }
  0x15   : > { %2997 = vmatpush.bf16.msra.mxu3 %v2915_v2  ;;  %987 = vmatpush.bf16.msra.mxu0 %v2915_v2  ;;  %v2938_v34 = vld [vmem:[%s4254_s1 + $0xe0] sm:$0xff]  ;;  %v438_v35 = vld [vmem:[%s3258_s19 + $0x150] sm:$0xff]  ;;  %v445_v36 = vld [vmem:[%s3258_s19 + $0x188] sm:$0xff] }
  0x16   : > { %v466_v37 = vld [vmem:[%s3258_s19 + $0x230] sm:$0xff]  ;;  %v473_v38 = vld [vmem:[%s3258_s19 + $0x268] sm:$0xff]  ;;  %v2929_v39 = vld [vmem:[%s4254_s1 + $0x98] sm:$0xff]  ;;  %v529_v45 = vpack.c.bf16 %v445_v36, %v438_v35 }
  0x17   : > { %v494_v40 = vld [vmem:[%s3258_s19 + $0x310] sm:$0xff]  ;;  %v501_v41 = vld [vmem:[%s3258_s19 + $0x348] sm:$0xff]  ;;  %v2946_v42 = vld [vmem:[%s4254_s1 + $0x120] sm:$0xff]  ;;  %v543_v46 = vpack.c.bf16 %v473_v38, %v466_v37 }
  0x18   : > { %2998 = vmatpush.bf16.msra.mxu1 %v2914_v3  ;;  %2999 = vmatpush.bf16.msra.mxu2 %v2914_v3  ;;  %v2921_v43 = vld [vmem:[%s4254_s1 + $0x58] sm:$0xff]  ;;  %v557_v47 = vpack.c.bf16 %v501_v41, %v494_v40  ;;  %v410_v48 = vld [vmem:[%s3258_s19 + $0x70] sm:$0xff]  ;;  %v417_v49 = vld [vmem:[%s3258_s19 + $0xa8] sm:$0xff] }
  0x19   : > { %3000 = vmatpush.bf16.msra.mxu3 %v2914_v3  ;;  %988 = vmatpush.bf16.msra.mxu0 %v2914_v3  ;;  %v2937_v44 = vld [vmem:[%s4254_s1 + $0xd8] sm:$0xff]  ;;  %v2928_v50 = vld [vmem:[%s4254_s1 + $0x90] sm:$0xff]  ;;  %v515_v54 = vpack.c.bf16 %v417_v49, %v410_v48  ;;  %v2927_v55 = vld [vmem:[%s4254_s1 + $0x88] sm:$0xff] }
  0x1a   : > { %v2945_v51 = vld [vmem:[%s4254_s1 + $0x118] sm:$0xff]  ;;  %v2920_v52 = vld [vmem:[%s4254_s1 + $0x50] sm:$0xff]  ;;  %v2919_v57 = vld [vmem:[%s4254_s1 + $0x48] sm:$0xff] }
  0x1b   : > { %v2936_v53 = vld [vmem:[%s4254_s1 + $0xd0] sm:$0xff]  ;;  %v2935_v58 = vld [vmem:[%s4254_s1 + $0xc8] sm:$0xff]  ;;  %v2926_v59 = vld [vmem:[%s4254_s1 + $0x80] sm:$0xff] }
  0x1c   : > { %3001 = vmatpush.bf16.msra.mxu1 %v2913_v4  ;;  %3002 = vmatpush.bf16.msra.mxu2 %v2913_v4  ;;  %v2944_v56 = vld [vmem:[%s4254_s1 + $0x110] sm:$0xff]  ;;  %v2943_v60 = vld [vmem:[%s4254_s1 + $0x108] sm:$0xff]  ;;  %v2918_v61 = vld [vmem:[%s4254_s1 + $0x40] sm:$0xff] }
  0x1d   : > { %3003 = vmatpush.bf16.msra.mxu3 %v2913_v4  ;;  %989 = vmatpush.bf16.msra.mxu0 %v2913_v4  ;;  %v2934_v62 = vld [vmem:[%s4254_s1 + $0xc0] sm:$0xff]  ;;  %v397_v63 = vld [vmem:[%s3258_s19 + $0x8] sm:$0xff]  ;;  %v2957_v1 = vld [vmem:[%s4254_s1 + $0x178] sm:$0xff] }
  0x1e   : > { %v2958_v0 = vld [vmem:[%s4254_s1 + $0x180] sm:$0xff]  ;;  %v398_v3 = vld [vmem:[%s3258_s19 + $0x10] sm:$0xff]  ;;  %v405_v4 = vld [vmem:[%s3258_s19 + $0x48] sm:$0xff] }
  0x1f   : > { %v404_v2 = vld [vmem:[%s3258_s19 + $0x40] sm:$0xff]  ;;  %v510_v9 = vpack.c.bf16 %v405_v4, %v398_v3  ;;  %v2956_v13 = vld [vmem:[%s4254_s1 + $0x170] sm:$0xff]  ;;  %v413_v20 = vld [vmem:[%s3258_s19 + $0x88] sm:$0xff] }
  0x20   : > { %3004 = vmatpush.bf16.msra.mxu1 %v2912_v5  ;;  %3005 = vmatpush.bf16.msra.mxu2 %v2912_v5  ;;  %v509_v8 = vpack.c.bf16 %v404_v2, %v397_v63  ;;  %v400_v11 = vld [vmem:[%s3258_s19 + $0x20] sm:$0xff]  ;;  %v2953_v41 = vld [vmem:[%s4254_s1 + $0x158] sm:$0xff]  ;;  %v2951_v3 = vld [vmem:[%s4254_s1 + $0x148] sm:$0xff] }
  0x21   : > { %3006 = vmatpush.bf16.msra.mxu3 %v2912_v5  ;;  %990 = vmatpush.bf16.msra.mxu0 %v2912_v5  ;;  %v399_v5 = vld [vmem:[%s3258_s19 + $0x18] sm:$0xff]  ;;  %v420_v21 = vld [vmem:[%s3258_s19 + $0xc0] sm:$0xff] }
  0x22   : > { %v428_v38 = vld [vmem:[%s3258_s19 + $0x100] sm:$0xff]  ;;  %v467_v4 = vld [vmem:[%s3258_s19 + $0x238] sm:$0xff] }
  0x24   : > { %3007 = vmatpush.bf16.msra.mxu1 %v2911_v6  ;;  %3008 = vmatpush.bf16.msra.mxu2 %v2911_v6 }
  0x25   : > { %3009 = vmatpush.bf16.msra.mxu3 %v2911_v6  ;;  %991 = vmatpush.bf16.msra.mxu0 %v2911_v6  ;;  %v406_v6 = vld [vmem:[%s3258_s19 + $0x50] sm:$0xff] }
  0x26   : > { %v511_v10 = vpack.c.bf16 %v406_v6, %v399_v5  ;;  %v474_v5 = vld [vmem:[%s3258_s19 + $0x270] sm:$0xff]  ;;  %v468_v6 = vld [vmem:[%s3258_s19 + $0x240] sm:$0xff] }
  0x28   : > { %3010 = vmatpush.bf16.msra.mxu1 %v2910_v7  ;;  %3011 = vmatpush.bf16.msra.mxu2 %v2910_v7 }
  0x29   : > { %3012 = vmatpush.bf16.msra.mxu3 %v2910_v7  ;;  %992 = vmatpush.bf16.msra.mxu0 %v2910_v7  ;;  %v2942_v7 = vld [vmem:[%s4254_s1 + $0x100] sm:$0xff] }
  0x2b   : > { %1003 = vmatmul.bf16.vlgmr.msra.gmra.mxu1 %v522_v17  ;;  %1013 = vmatmul.bf16.vlgmr.msra.gmra.mxu2 %v536_v18  ;;  %v418_v17 = vld [vmem:[%s3258_s19 + $0xb0] sm:$0xff]  ;;  %v412_v18 = vld [vmem:[%s3258_s19 + $0x80] sm:$0xff] }
  0x2c   : > { %1083 = vmatpush.bf16.msrb.mxu2 %v2933_v12  ;;  %1034 = vmatpush.bf16.msrb.mxu1 %v2925_v15  ;;  %v407_v12 = vld [vmem:[%s3258_s19 + $0x58] sm:$0xff]  ;;  %v2955_v15 = vld [vmem:[%s4254_s1 + $0x168] sm:$0xff] }
  0x2d   : > { %1132 = vmatpush.bf16.msrb.mxu3 %v2941_v16  ;;  %1181 = vmatpush.bf16.msrb.mxu0 %v2949_v23  ;;  %v512_v14 = vpack.c.bf16 %v407_v12, %v400_v11  ;;  %v411_v16 = vld [vmem:[%s3258_s19 + $0x78] sm:$0xff] }
  0x2e   : > { %1023 = vmatmul.bf16.vlgmr.msra.gmra.mxu3 %v550_v19  ;;  %993 = vmatmul.bf16.vlgmr.msra.gmra.mxu0 %v508_v26  ;;  %v419_v19 = vld [vmem:[%s3258_s19 + $0xb8] sm:$0xff]  ;;  %v421_v26 = vld [vmem:[%s3258_s19 + $0xc8] sm:$0xff] }
  0x2f   : > { %v517_v23 = vpack.c.bf16 %v419_v19, %v412_v18  ;;  %v488_v18 = vld [vmem:[%s3258_s19 + $0x2e0] sm:$0xff]  ;;  %v482_v19 = vld [vmem:[%s3258_s19 + $0x2b0] sm:$0xff] }
  0x30   : > { %1084 = vmatpush.bf16.msrb.mxu2 %v2932_v22  ;;  %1035 = vmatpush.bf16.msrb.mxu1 %v2924_v24  ;;  %v516_v22 = vpack.c.bf16 %v418_v17, %v411_v16  ;;  %v518_v24 = vpack.c.bf16 %v420_v21, %v413_v20  ;;  %v2950_v16 = vld [vmem:[%s4254_s1 + $0x140] sm:$0xff]  ;;  %v481_v17 = vld [vmem:[%s3258_s19 + $0x2a8] sm:$0xff]  ;;  %v483_v21 = vld [vmem:[%s3258_s19 + $0x2b8] sm:$0xff] }
  0x31   : > { %1133 = vmatpush.bf16.msrb.mxu3 %v2940_v25  ;;  %1182 = vmatpush.bf16.msrb.mxu0 %v2948_v28  ;;  %v414_v25 = vld [vmem:[%s3258_s19 + $0x90] sm:$0xff]  ;;  %v2954_v28 = vld [vmem:[%s4254_s1 + $0x160] sm:$0xff]  ;;  %v489_v20 = vld [vmem:[%s3258_s19 + $0x2e8] sm:$0xff] }
  0x34   : > { %1085 = vmatpush.bf16.msrb.mxu2 %v2931_v27  ;;  %1036 = vmatpush.bf16.msrb.mxu1 %v2923_v29  ;;  %v519_v27 = vpack.c.bf16 %v421_v26, %v414_v25  ;;  %v425_v29 = vld [vmem:[%s3258_s19 + $0xe8] sm:$0xff] }
  0x35   : > { %1134 = vmatpush.bf16.msrb.mxu3 %v2939_v30  ;;  %1183 = vmatpush.bf16.msrb.mxu0 %v2947_v32  ;;  %v432_v30 = vld [vmem:[%s3258_s19 + $0x120] sm:$0xff]  ;;  %v433_v32 = vld [vmem:[%s3258_s19 + $0x128] sm:$0xff] }
  0x36   : > { %v523_v35 = vpack.c.bf16 %v432_v30, %v425_v29  ;;  %v3463_v30 = vld [vmem:[%s4255_s2] ss:$0 sm:$0xff] }
  0x38   : > { %1086 = vmatpush.bf16.msrb.mxu2 %v2930_v31  ;;  %1037 = vmatpush.bf16.msrb.mxu1 %v2922_v33  ;;  %v426_v31 = vld [vmem:[%s3258_s19 + $0xf0] sm:$0xff]  ;;  %v427_v33 = vld [vmem:[%s3258_s19 + $0xf8] sm:$0xff] }
  0x39   : > { %1135 = vmatpush.bf16.msrb.mxu3 %v2938_v34  ;;  %1184 = vmatpush.bf16.msrb.mxu0 %v2946_v42  ;;  %v434_v34 = vld [vmem:[%s3258_s19 + $0x130] sm:$0xff]  ;;  %v524_v36 = vpack.c.bf16 %v433_v32, %v426_v31  ;;  %v439_v42 = vld [vmem:[%s3258_s19 + $0x158] sm:$0xff] }
  0x3a   : > { %v525_v37 = vpack.c.bf16 %v434_v34, %v427_v33 }
  0x3b   : > { %1008 = vmatmul.bf16.gmra.mxu1 %v529_v45  ;;  %1018 = vmatmul.bf16.gmra.mxu2 %v543_v46  ;;  %v447_v45 = vld [vmem:[%s3258_s19 + $0x198] sm:$0xff]  ;;  %v441_v46 = vld [vmem:[%s3258_s19 + $0x168] sm:$0xff] }
  0x3c   : > { %1087 = vmatpush.bf16.msrb.mxu2 %v2929_v39  ;;  %1038 = vmatpush.bf16.msrb.mxu1 %v2921_v43  ;;  %v435_v39 = vld [vmem:[%s3258_s19 + $0x138] sm:$0xff]  ;;  %v446_v43 = vld [vmem:[%s3258_s19 + $0x190] sm:$0xff] }
  0x3d   : > { %1136 = vmatpush.bf16.msrb.mxu3 %v2937_v44  ;;  %1185 = vmatpush.bf16.msrb.mxu0 %v2945_v51  ;;  %v526_v40 = vpack.c.bf16 %v435_v39, %v428_v38  ;;  %v440_v44 = vld [vmem:[%s3258_s19 + $0x160] sm:$0xff]  ;;  %v530_v48 = vpack.c.bf16 %v446_v43, %v439_v42  ;;  %v442_v51 = vld [vmem:[%s3258_s19 + $0x170] sm:$0xff]  ;;  %v503_v39 = vld [vmem:[%s3258_s19 + $0x358] sm:$0xff] }
  0x3e   : > { %1028 = vmatmul.bf16.gmra.mxu3 %v557_v47  ;;  %998 = vmatmul.bf16.gmra.mxu0 %v515_v54  ;;  %v448_v47 = vld [vmem:[%s3258_s19 + $0x1a0] sm:$0xff]  ;;  %v531_v49 = vpack.c.bf16 %v447_v45, %v440_v44  ;;  %v2952_v54 = vld [vmem:[%s4254_s1 + $0x150] sm:$0xff] }
  0x3f   : > { %v496_v38 = vld [vmem:[%s3258_s19 + $0x320] sm:$0xff] }
  0x40   : > { %1088 = vmatpush.bf16.msrb.mxu2 %v2928_v50  ;;  %1039 = vmatpush.bf16.msrb.mxu1 %v2920_v52  ;;  %v532_v50 = vpack.c.bf16 %v448_v47, %v441_v46  ;;  %v449_v52 = vld [vmem:[%s3258_s19 + $0x1a8] sm:$0xff]  ;;  %v559_v46 = vpack.c.bf16 %v503_v39, %v496_v38  ;;  %v2961_v38 = vld [vmem:[%s4256_s3 + $0x10] sm:$0xff]  ;;  %v436_v39 = vld [vmem:[%s3258_s19 + $0x140] sm:$0xff] }
  0x41   : > { %1137 = vmatpush.bf16.msrb.mxu3 %v2936_v53  ;;  %1186 = vmatpush.bf16.msrb.mxu0 %v2944_v56  ;;  %v533_v53 = vpack.c.bf16 %v449_v52, %v442_v51  ;;  %v460_v56 = vld [vmem:[%s3258_s19 + $0x200] sm:$0xff] }
  0x44   : > { %1089 = vmatpush.bf16.msrb.mxu2 %v2927_v55  ;;  %1040 = vmatpush.bf16.msrb.mxu1 %v2919_v57  ;;  %v453_v55 = vld [vmem:[%s3258_s19 + $0x1c8] sm:$0xff]  ;;  %v454_v57 = vld [vmem:[%s3258_s19 + $0x1d0] sm:$0xff] }
  0x45   : > { %1138 = vmatpush.bf16.msrb.mxu3 %v2935_v58  ;;  %1187 = vmatpush.bf16.msrb.mxu0 %v2943_v60  ;;  %v461_v58 = vld [vmem:[%s3258_s19 + $0x208] sm:$0xff]  ;;  %v462_v60 = vld [vmem:[%s3258_s19 + $0x210] sm:$0xff] }
  0x48   : > { %1090 = vmatpush.bf16.msrb.mxu2 %v2926_v59  ;;  %1041 = vmatpush.bf16.msrb.mxu1 %v2918_v61  ;;  %v455_v59 = vld [vmem:[%s3258_s19 + $0x1d8] sm:$0xff]  ;;  %v537_v61 = vpack.c.bf16 %v460_v56, %v453_v55 }
  0x49   : > { %1139 = vmatpush.bf16.msrb.mxu3 %v2934_v62  ;;  %1188 = vmatpush.bf16.msrb.mxu0 %v2942_v7  ;;  %v538_v62 = vpack.c.bf16 %v461_v58, %v454_v57  ;;  %v539_v63 = vpack.c.bf16 %v462_v60, %v455_v59  ;;  %v475_v7 = vld [vmem:[%s3258_s19 + $0x278] sm:$0xff]  ;;  %v401_v58 = vld [vmem:[%s3258_s19 + $0x28] sm:$0xff]  ;;  %v408_v60 = vld [vmem:[%s3258_s19 + $0x60] sm:$0xff] }
  0x4a   : > { %v545_v11 = vpack.c.bf16 %v475_v7, %v468_v6  ;;  %v1358_v59 = vld [vmem:[%s4256_s3 + $0x18] sm:$0x1] }
  0x4b   : > { %1042 = vmatmul.bf16.vlgmr.msrb.gmra.mxu1 %v509_v8  ;;  %1091 = vmatmul.bf16.vlgmr.msrb.gmra.mxu2 %v510_v9  ;;  %v469_v8 = vld [vmem:[%s3258_s19 + $0x248] sm:$0xff]  ;;  %v476_v9 = vld [vmem:[%s3258_s19 + $0x280] sm:$0xff] }
  0x4c   : > { %1286 = vmatpush.bf16.msra.mxu2 %v2958_v0  ;;  %1230 = vmatpush.bf16.msra.mxu1 %v2957_v1  ;;  %v456_v0 = vld [vmem:[%s3258_s19 + $0x1e0] sm:$0xff]  ;;  %v463_v1 = vld [vmem:[%s3258_s19 + $0x218] sm:$0xff]  ;;  %v546_v12 = vpack.c.bf16 %v476_v9, %v469_v8 }
  0x4d   : > { %v540_v2 = vpack.c.bf16 %v463_v1, %v456_v0 }
  0x4e   : > { %1140 = vmatmul.bf16.vlgmr.msrb.gmra.mxu3 %v511_v10  ;;  %1189 = vmatmul.bf16.vlgmr.msrb.gmra.mxu0 %v512_v14  ;;  %v544_v10 = vpack.c.bf16 %v474_v5, %v467_v4  ;;  %v477_v14 = vld [vmem:[%s3258_s19 + $0x288] sm:$0xff]  ;;  %v513_v4 = vpack.c.bf16 %v408_v60, %v401_v58 }
  0x50   : > { %1231 = vmatpush.bf16.msra.mxu1 %v2956_v13  ;;  %v470_v13 = vld [vmem:[%s3258_s19 + $0x250] sm:$0xff] }
  0x54   : > { %1232 = vmatpush.bf16.msra.mxu1 %v2955_v15  ;;  %v547_v15 = vpack.c.bf16 %v477_v14, %v470_v13  ;;  %v415_v14 = vld [vmem:[%s3258_s19 + $0x98] sm:$0xff] }
  0x58   : > { %1233 = vmatpush.bf16.msra.mxu1 %v2954_v28  ;;  %v491_v28 = vld [vmem:[%s3258_s19 + $0x2f8] sm:$0xff] }
  0x5b   : > { %1047 = vmatmul.bf16.gmra.mxu1 %v516_v22  ;;  %1096 = vmatmul.bf16.gmra.mxu2 %v517_v23  ;;  %v490_v22 = vld [vmem:[%s3258_s19 + $0x2f0] sm:$0xff]  ;;  %v551_v23 = vpack.c.bf16 %v488_v18, %v481_v17  ;;  %v423_v17 = vld [vmem:[%s3258_s19 + $0xd8] sm:$0xff] }
  0x5c   : > { %1234 = vmatpush.bf16.msra.mxu1 %v2953_v41  ;;  %v553_v26 = vpack.c.bf16 %v490_v22, %v483_v21  ;;  %v504_v41 = vld [vmem:[%s3258_s19 + $0x360] sm:$0xff] }
  0x5e   : > { %1145 = vmatmul.bf16.gmra.mxu3 %v518_v24  ;;  %1194 = vmatmul.bf16.gmra.mxu0 %v519_v27  ;;  %v552_v24 = vpack.c.bf16 %v489_v20, %v482_v19  ;;  %v484_v27 = vld [vmem:[%s3258_s19 + $0x2c0] sm:$0xff] }
  0x5f   : > { %v554_v29 = vpack.c.bf16 %v491_v28, %v484_v27 }
  0x60   : > { %1235 = vmatpush.bf16.msra.mxu1 %v2952_v54 }
  0x64   : > { %1236 = vmatpush.bf16.msra.mxu1 %v2951_v3 }
  0x68   : > { %1237 = vmatpush.bf16.msra.mxu1 %v2950_v16  ;;  %v416_v16 = vld [vmem:[%s3258_s19 + $0xa0] sm:$0xff] }
  0x6b   : > { %1052 = vmatmul.bf16.gmra.mxu1 %v523_v35  ;;  %1101 = vmatmul.bf16.gmra.mxu2 %v524_v36  ;;  %v495_v36 = vld [vmem:[%s3258_s19 + $0x318] sm:$0xff] }
  0x6e   : > { %1150 = vmatmul.bf16.gmra.mxu3 %v525_v37  ;;  %1199 = vmatmul.bf16.gmra.mxu0 %v526_v40  ;;  %v502_v37 = vld [vmem:[%s3258_s19 + $0x350] sm:$0xff]  ;;  %v497_v40 = vld [vmem:[%s3258_s19 + $0x328] sm:$0xff] }
  0x6f   : > { %v558_v45 = vpack.c.bf16 %v502_v37, %v495_v36  ;;  %v429_v37 = vld [vmem:[%s3258_s19 + $0x108] sm:$0xff] }
  0x7b   : > { %1057 = vmatmul.bf16.gmra.mxu1 %v530_v48  ;;  %1106 = vmatmul.bf16.gmra.mxu2 %v531_v49  ;;  %v560_v48 = vpack.c.bf16 %v504_v41, %v497_v40  ;;  %v498_v49 = vld [vmem:[%s3258_s19 + $0x330] sm:$0xff]  ;;  %v437_v41 = vld [vmem:[%s3258_s19 + $0x148] sm:$0xff] }
  0x7c   : > { %v430_v40 = vld [vmem:[%s3258_s19 + $0x110] sm:$0xff] }
  0x7e   : > { %1155 = vmatmul.bf16.gmra.mxu3 %v532_v50  ;;  %1204 = vmatmul.bf16.gmra.mxu0 %v533_v53  ;;  %v505_v50 = vld [vmem:[%s3258_s19 + $0x368] sm:$0xff] }
  0x7f   : > { %v561_v51 = vpack.c.bf16 %v505_v50, %v498_v49  ;;  %v527_v49 = vpack.c.bf16 %v436_v39, %v429_v37  ;;  %v528_v50 = vpack.c.bf16 %v437_v41, %v430_v40 }
  0x8b   : > { %1062 = vmatmul.bf16.gmra.mxu1 %v537_v61  ;;  %1111 = vmatmul.bf16.gmra.mxu2 %v538_v62  ;;  %v402_v61 = vld [vmem:[%s3258_s19 + $0x30] sm:$0xff]  ;;  %v409_v62 = vld [vmem:[%s3258_s19 + $0x68] sm:$0xff] }
  0x8c   : > { %v514_v5 = vpack.c.bf16 %v409_v62, %v402_v61  ;;  %v443_v61 = vld [vmem:[%s3258_s19 + $0x178] sm:$0xff]  ;;  %v444_v62 = vld [vmem:[%s3258_s19 + $0x180] sm:$0xff] }
  0x8e   : > { %1160 = vmatmul.bf16.gmra.mxu3 %v539_v63  ;;  %1209 = vmatmul.bf16.gmra.mxu0 %v540_v2  ;;  %v1376_v63 = vunpack.c.l.b16 %v1358_v59 }
  0x90   : > { %v1380_v1 = vpack.c.b16 %v1376_v63, %v1376_v63  ;;  %v451_v63 = vld [vmem:[%s3258_s19 + $0x1b8] sm:$0xff] }
  0x92   : > { %v1411_v7 = vsel %vm1409_vm0, %v1380_v1, 0 }
  0x93   : > { %1417 = vmatpush.bf16.msra.mxu3 %v1411_v7 }
  0x97   : > { %1418 = vmatpush.bf16.msra.mxu3 %v2961_v38 }
  0x9b   : > { %1067 = vmatmul.bf16.gmra.mxu1 %v544_v10  ;;  %1116 = vmatmul.bf16.gmra.mxu2 %v545_v11 }
  0x9e   : > { %1165 = vmatmul.bf16.gmra.mxu3 %v546_v12  ;;  %1214 = vmatmul.bf16.gmra.mxu0 %v547_v15  ;;  %v422_v15 = vld [vmem:[%s3258_s19 + $0xd0] sm:$0xff] }
  0xa8   : > { %v3456_v25 = vpop.f32.mrf.mxu1 }
  0xab   : > { %1072 = vmatmul.bf16.gmra.mxu1 %v551_v23  ;;  %1121 = vmatmul.bf16.gmra.mxu2 %v552_v24  ;;  %v994_v57 = vpop.f32.mrf.mxu0  ;;  %v520_v23 = vpack.c.bf16 %v422_v15, %v415_v14  ;;  %v521_v24 = vpack.c.bf16 %v423_v17, %v416_v16  ;;  %v464_v14 = vld [vmem:[%s3258_s19 + $0x220] sm:$0xff]  ;;  %v458_v15 = vld [vmem:[%s3258_s19 + $0x1f0] sm:$0xff]  ;;  %v465_v16 = vld [vmem:[%s3258_s19 + $0x228] sm:$0xff] }
  0xac   : > { %v995_v2 = vadd.f32 %v3463_v30, %v994_v57 }
  0xae   : > { %1170 = vmatmul.bf16.gmra.mxu3 %v553_v26  ;;  %v1014_v31 = vpop.f32.mrf.mxu2  ;;  %1219 = vmatmul.bf16.gmra.mxu0 %v554_v29 }
  0xaf   : > { %v3466_v32 = vadd.f32 %v3463_v30, %v1014_v31 }
  0xb0   : > { %v3468_v34 = vpop.f32.mrf.mxu1 }
  0xb1   : > { %v1024_v33 = vpop.f32.mrf.mxu3  ;;  %v1007_v57 = vadd.f32 %v3463_v30, %v3468_v34  ;;  %v535_v34 = vpack.c.bf16 %v451_v63, %v444_v62 }
  0xb2   : > { %v3471_v35 = vadd.f32 %v3463_v30, %v1024_v33 }
  0xb3   : > { %v996_v9 = vpop.f32.mrf.mxu0 }
  0xb4   : > { %v997_v13 = vadd.f32 %v3463_v30, %v996_v9 }
  0xb6   : > { %v1016_v42 = vpop.f32.mrf.mxu2 }
  0xb7   : > { %v3480_v43 = vadd.f32 %v3463_v30, %v1016_v42 }
  0xb8   : > { %v3484_v47 = vpop.f32.mrf.mxu1 }
  0xb9   : > { %v3482_v44 = vpop.f32.mrf.mxu3  ;;  %v1010_v1 = vadd.f32 %v3463_v30, %v3484_v47  ;;  %v457_v47 = vld [vmem:[%s3258_s19 + $0x1e8] sm:$0xff] }
  0xbb   : > { %1077 = vmatmul.bf16.gmra.mxu1 %v558_v45  ;;  %1126 = vmatmul.bf16.gmra.mxu2 %v559_v46  ;;  %v999_v19 = vpop.f32.mrf.mxu0  ;;  %v1005_v46 = vadd.f32 %v3463_v30, %v3456_v25  ;;  %v450_v25 = vld [vmem:[%s3258_s19 + $0x1b0] sm:$0xff] }
  0xbc   : > { %v1000_v21 = vadd.f32 %v3463_v30, %v999_v19  ;;  %v542_v19 = vpack.c.bf16 %v465_v16, %v458_v15 }
  0xbe   : > { %1175 = vmatmul.bf16.gmra.mxu3 %v560_v48  ;;  %v1019_v52 = vpop.f32.mrf.mxu2  ;;  %1224 = vmatmul.bf16.gmra.mxu0 %v561_v51 }
  0xbf   : > { %v3489_v53 = vadd.f32 %v3463_v30, %v1019_v52 }
  0xc0   : > { %v3491_v55 = vpop.f32.mrf.mxu1 }
  0xc1   : > { %v1029_v54 = vpop.f32.mrf.mxu3 }
  0xc2   : > { %v3494_v56 = vadd.f32 %v3463_v30, %v1029_v54 }
  0xc3   : > { %v1001_v31 = vpop.f32.mrf.mxu0 }
  0xc4   : > { %v1002_v36 = vadd.f32 %v3463_v30, %v1001_v31  ;;  %v472_v31 = vld [vmem:[%s3258_s19 + $0x260] sm:$0xff] }
  0xc6   : > { %v1021_v0 = vpop.f32.mrf.mxu2 }
  0xc7   : > { %v3505_v3 = vadd.f32 %v3463_v30, %v1021_v0 }
  0xc8   : > { %v1043_v6 = vpop.f32.mrf.mxu1 }
  0xc9   : > { %v1044_v8 = vadd.f32 %v1043_v6, %v995_v2  ;;  %v3575_v40 = vpop.f32.mrf.mxu3 }
  0xcb   : > { %1238 = vmatmul.bf16.vlgmr.msra.gmra.mxu1 %v513_v4  ;;  %2700 = vmatmul.msk.bf16.vlgmr.msra.gmra.mxu2 %vm960_vm1, %v514_v5  ;;  %v534_v4 = vpack.c.bf16 %v450_v25, %v443_v61  ;;  %v1190_v25 = vpop.f32.mrf.mxu0 }
  0xce   : > { %v1092_v10 = vpop.f32.mrf.mxu2 }
  0xcf   : > { %v3509_v11 = vadd.f32 %v1092_v10, %v1044_v8  ;;  %v1012_v8 = vadd.f32 %v3463_v30, %v3491_v55  ;;  %v541_v55 = vpack.c.bf16 %v464_v14, %v457_v47 }
  0xd0   : > { %v1045_v12 = vpop.f32.mrf.mxu1 }
  0xd1   : > { %v1046_v18 = vadd.f32 %v1045_v12, %v997_v13  ;;  %v2960_v13 = vld [vmem:[%s4256_s3 + $0x8] sm:$0xff] }
  0xd2   : > { %1419 = vmatpush.bf16.msra.mxu3 %v2960_v13 }
  0xd6   : > { %v1094_v20 = vpop.f32.mrf.mxu2 }
  0xd7   : > { %v3517_v22 = vadd.f32 %v1094_v20, %v1046_v18 }
  0xd8   : > { %v1048_v26 = vpop.f32.mrf.mxu1 }
  0xd9   : > { %v1049_v27 = vadd.f32 %v1048_v26, %v1000_v21 }
  0xdb   : > { %1243 = vmatmul.bf16.gmra.mxu1 %v520_v23  ;;  %2701 = vmatmul.msk.bf16.gmra.mxu2 %vm960_vm1, %v521_v24 }
  0xde   : > { %v1097_v28 = vpop.f32.mrf.mxu2 }
  0xdf   : > { %v3520_v29 = vadd.f32 %v1097_v28, %v1049_v27  ;;  %v471_v27 = vld [vmem:[%s3258_s19 + $0x258] sm:$0xff]  ;;  %v478_v28 = vld [vmem:[%s3258_s19 + $0x290] sm:$0xff] }
  0xe0   : > { %v1050_v33 = vpop.f32.mrf.mxu1  ;;  %v548_v37 = vpack.c.bf16 %v478_v28, %v471_v27 }
  0xe1   : > { %v1051_v42 = vadd.f32 %v1050_v33, %v1002_v36  ;;  %v479_v33 = vld [vmem:[%s3258_s19 + $0x298] sm:$0xff] }
  0xe6   : > { %v1099_v45 = vpop.f32.mrf.mxu2 }
  0xe7   : > { %v3532_v48 = vadd.f32 %v1099_v45, %v1051_v42 }
  0xe8   : > { %v1053_v51 = vpop.f32.mrf.mxu1 }
  0xe9   : > { %v1054_v52 = vadd.f32 %v1053_v51, %v1005_v46  ;;  %v485_v46 = vld [vmem:[%s3258_s19 + $0x2c8] sm:$0xff]  ;;  %v486_v51 = vld [vmem:[%s3258_s19 + $0x2d0] sm:$0xff] }
  0xeb   : > { %1248 = vmatmul.bf16.gmra.mxu1 %v527_v49  ;;  %2702 = vmatmul.msk.bf16.gmra.mxu2 %vm960_vm1, %v528_v50  ;;  %v2959_v49 = vld [vmem:[%s4256_s3] sm:$0xff] }
  0xec   : > { %v492_v50 = vld [vmem:[%s3258_s19 + $0x300] sm:$0xff]  ;;  %1420 = vmatpush.bf16.msra.mxu3 %v2959_v49 }
  0xee   : > { %v1102_v54 = vpop.f32.mrf.mxu2 }
  0xef   : > { %v3537_v58 = vadd.f32 %v1102_v54, %v1054_v52  ;;  %v493_v52 = vld [vmem:[%s3258_s19 + $0x308] sm:$0xff] }
  0xf0   : > { %v1055_v59 = vpop.f32.mrf.mxu1 }
  0xf1   : > { %v1056_v60 = vadd.f32 %v1055_v59, %v1007_v57  ;;  %v555_v57 = vpack.c.bf16 %v492_v50, %v485_v46  ;;  %v556_v59 = vpack.c.bf16 %v493_v52, %v486_v51 }
  0xf6   : > { %v1104_v0 = vpop.f32.mrf.mxu2 }
  0xf7   : > { %v3545_v2 = vadd.f32 %v1104_v0, %v1056_v60 }
  0xf8   : > { %v1058_v5 = vpop.f32.mrf.mxu1 }
  0xf9   : > { %v1059_v6 = vadd.f32 %v1058_v5, %v1010_v1  ;;  %v506_v5 = vld [vmem:[%s3258_s19 + $0x370] sm:$0xff] }
  0xfb   : > { %1253 = vmatmul.bf16.gmra.mxu1 %v534_v4  ;;  %2703 = vmatmul.msk.bf16.gmra.mxu2 %vm960_vm1, %v535_v34  ;;  %v499_v4 = vld [vmem:[%s3258_s19 + $0x338] sm:$0xff]  ;;  %v1192_v34 = vpop.f32.mrf.mxu0 }
  0xfe   : > { %v1107_v7 = vpop.f32.mrf.mxu2 }
  0xff   : > { %v3550_v9 = vadd.f32 %v1107_v7, %v1059_v6  ;;  %v500_v6 = vld [vmem:[%s3258_s19 + $0x340] sm:$0xff]  ;;  %v507_v7 = vld [vmem:[%s3258_s19 + $0x378] sm:$0xff]  ;;  %s3995_s19 = scalar_lea.vmem %s4264_s11, %s3014_s13 }
 0x100   : > { %v1060_v10 = vpop.f32.mrf.mxu1 }
 0x101   : > { %v1061_v12 = vadd.f32 %v1060_v10, %v1012_v8  ;;  %v562_v10 = vpack.c.bf16 %v506_v5, %v499_v4 }
 0x103   : > { %v1195_v14 = vpop.f32.mrf.mxu0 }
 0x106   : > { %v1109_v17 = vpop.f32.mrf.mxu2 }
 0x107   : > { %v3559_v18 = vadd.f32 %v1109_v17, %v1061_v12  ;;  %v563_v12 = vpack.c.bf16 %v507_v7, %v500_v6 }
 0x108   : > { %v1063_v20 = vpop.f32.mrf.mxu1 }
 0x109   : > { %v1064_v21 = vadd.f32 %v1063_v20, %v3466_v32  ;;  %v549_v32 = vpack.c.bf16 %v479_v33, %v472_v31 }
 0x10b   : > { %1258 = vmatmul.bf16.gmra.mxu1 %v541_v55  ;;  %2704 = vmatmul.msk.bf16.gmra.mxu2 %vm960_vm1, %v542_v19  ;;  %v1197_v20 = vpop.f32.mrf.mxu0 }
 0x10e   : > { %v1112_v23 = vpop.f32.mrf.mxu2 }
 0x10f   : > { %v3563_v24 = vadd.f32 %v1112_v23, %v1064_v21 }
 0x110   : > { %v3565_v26 = vpop.f32.mrf.mxu1 }
 0x116   : > { %v3571_v36 = vpop.f32.mrf.mxu2 }
 0x118   : > { %v1068_v38 = vpop.f32.mrf.mxu1 }
 0x119   : > { %v1069_v39 = vadd.f32 %v1068_v38, %v3489_v53  ;;  %v1141_v53 = vpop.f32.mrf.mxu3 }
 0x11a   : > { %v1142_v23 = vadd.f32 %v1141_v53, %v3509_v11  ;;  %v1492_v11 = vld [vmem:[%s4258_s5 + $0x18] sm:$0x1] }
 0x11b   : > { %1263 = vmatmul.bf16.gmra.mxu1 %v548_v37  ;;  %2705 = vmatmul.msk.bf16.gmra.mxu2 %vm960_vm1, %v549_v32  ;;  %v1200_v37 = vpop.f32.mrf.mxu0  ;;  %v1510_v52 = vunpack.c.l.b16 %v1492_v11 }
 0x11c   : > { %v1191_v31 = vadd.f32 %v1190_v25, %v1142_v23 }
 0x11e   : > { %v1117_v41 = vpop.f32.mrf.mxu2 }
 0x11f   : > { %v3577_v42 = vadd.f32 %v1117_v41, %v1069_v39 }
 0x120   : > { %v3579_v45 = vpop.f32.mrf.mxu1 }
 0x121   : > { %v1143_v0 = vpop.f32.mrf.mxu3 }
 0x123   : > { %v1202_v53 = vpop.f32.mrf.mxu0 }
 0x126   : > { %v3588_v54 = vpop.f32.mrf.mxu2 }
 0x128   : > { %v1073_v60 = vpop.f32.mrf.mxu1 }
 0x129   : > { %v1074_v61 = vadd.f32 %v1073_v60, %v3471_v35  ;;  %v1146_v13 = vpop.f32.mrf.mxu3 }
 0x12b   : > { %1268 = vmatmul.bf16.gmra.mxu1 %v555_v57  ;;  %2706 = vmatmul.msk.bf16.gmra.mxu2 %vm960_vm1, %v556_v59  ;;  %v1514_v57 = vpack.c.b16 %v1510_v52, %v1510_v52 }
 0x12e   : > { %v1122_v62 = vpop.f32.mrf.mxu2 }
 0x12f   : > { %v3592_v63 = vadd.f32 %v1122_v62, %v1074_v61  ;;  %v1543_v61 = vsel %vm1409_vm0, %v1514_v57, 0 }
 0x130   : > { %v3594_v1 = vpop.f32.mrf.mxu1  ;;  %1549 = vmatpush.bf16.msra.mxu0 %v1543_v61 }
 0x131   : > { %v1148_v55 = vpop.f32.mrf.mxu3 }
 0x132   : > { %v1149_v62 = vadd.f32 %v1148_v55, %v3532_v48 }
 0x134   : > { %v1198_v7 = vadd.f32 %v1197_v20, %v1149_v62 }
 0x136   : > { %v3600_v8 = vpop.f32.mrf.mxu2 }
 0x138   : > { %v1078_v35 = vpop.f32.mrf.mxu1 }
 0x139   : > { %v1079_v47 = vadd.f32 %v1078_v35, %v3494_v56  ;;  %v1151_v27 = vpop.f32.mrf.mxu3  ;;  %v1144_v56 = vadd.f32 %v1143_v0, %v3517_v22  ;;  %v1147_v22 = vadd.f32 %v1146_v13, %v3520_v29 }
 0x13a   : > { %v1152_v48 = vadd.f32 %v1151_v27, %v3537_v58 }
 0x13b   : > { %1273 = vmatmul.bf16.gmra.mxu1 %v562_v10  ;;  %2707 = vmatmul.msk.bf16.gmra.mxu2 %vm960_vm1, %v563_v12  ;;  %v1193_v38 = vadd.f32 %v1192_v34, %v1144_v56  ;;  %v1196_v0 = vadd.f32 %v1195_v14, %v1147_v22  ;;  %v1205_v12 = vpop.f32.mrf.mxu0 }
 0x13e   : > { %v1127_v15 = vpop.f32.mrf.mxu2 }
 0x13f   : > { %v3604_v16 = vadd.f32 %v1127_v15, %v1079_v47 }
 0x140   : > { %v3606_v17 = vpop.f32.mrf.mxu1 }
 0x141   : > { %v1153_v50 = vpop.f32.mrf.mxu3 }
 0x142   : > { %v1154_v23 = vadd.f32 %v1153_v50, %v3545_v2  ;;  %v2964_v2 = vld [vmem:[%s4258_s5 + $0x10] sm:$0xff] }
 0x143   : > { %v1207_v56 = vpop.f32.mrf.mxu0  ;;  %1550 = vmatpush.bf16.msra.mxu0 %v2964_v2 }
 0x146   : > { %v3608_v19 = vpop.f32.mrf.mxu2 }
 0x148   : > { %v1239_v21 = vpop.f32.mrf.mxu1 }
 0x149   : > { %v1240_v32 = vadd.f32 %v1239_v21, %v1191_v31  ;;  %v1156_v5 = vpop.f32.mrf.mxu3 }
 0x14b   : > { %v1210_v27 = vpop.f32.mrf.mxu0 }
 0x14e   : > { %v1288_v28 = vpop.f32.mrf.mxu2 }
 0x14f   : > { %v1289_v39 = vadd.f32 %v1288_v28, %v1240_v32  ;;  %v1201_v28 = vadd.f32 %v1200_v37, %v1152_v48  ;;  %v1203_v32 = vadd.f32 %v1202_v53, %v1154_v23  ;;  %v1157_v37 = vadd.f32 %v1156_v5, %v3550_v9 }
 0x150   : > { %v1241_v33 = vpop.f32.mrf.mxu1  ;;  %v1066_v5 = vadd.f32 %v3565_v26, %v3480_v43 }
 0x151   : > { %v1242_v41 = vadd.f32 %v1241_v33, %v1193_v38  ;;  %3027 = vtanh.f32 %v1289_v39  ;;  %v1158_v15 = vpop.f32.mrf.mxu3  ;;  %v1206_v22 = vadd.f32 %v1205_v12, %v1157_v37 }
 0x152   : > { %v1159_v52 = vadd.f32 %v1158_v15, %v3559_v18 }
 0x154   : > { %v1208_v61 = vadd.f32 %v1207_v56, %v1159_v52  ;;  %v1071_v56 = vadd.f32 %v3579_v45, %v3505_v3 }
 0x156   : > { %v1290_v46 = vpop.f32.mrf.mxu2 }
 0x157   : > { %v1291_v49 = vadd.f32 %v1290_v46, %v1242_v41  ;;  %v3028_v59 = vpop.eup %3027 }
 0x158   : > { %v1244_v51 = vpop.f32.mrf.mxu1 }
 0x159   : > { %3029 = vtanh.f32 %v1291_v49  ;;  %v1245_v6 = vadd.f32 %v1244_v51, %v1196_v0  ;;  %v1161_v41 = vpop.f32.mrf.mxu3 }
 0x15e   : > { %v1293_v60 = vpop.f32.mrf.mxu2 }
 0x15f   : > { %v3030_v25 = vpop.eup %3029  ;;  %v1294_v29 = vadd.f32 %v1293_v60, %v1245_v6  ;;  %v1115_v6 = vadd.f32 %v3571_v36, %v1066_v5 }
 0x160   : > { %v1344_v4 = vpack.c.bf16 %v3030_v25, %v3028_v59  ;;  %v1246_v34 = vpop.f32.mrf.mxu1  ;;  %v1212_v25 = vpop.f32.mrf.mxu0 }
 0x161   : > { %v1247_v10 = vadd.f32 %v1246_v34, %v1198_v7  ;;  %3031 = vtanh.f32 %v1294_v29  ;;  %v1163_v53 = vpop.f32.mrf.mxu3  ;;  %v1162_v7 = vadd.f32 %v1161_v41, %v3563_v24 }
 0x162   : > { %2720 = vmatmul.msk.bf16.vlgmr.msra.gmra.mxu3 %vm1384_vm2, %v1344_v4 }
 0x166   : > { %v1295_v35 = vpop.f32.mrf.mxu2 }
 0x167   : > { %v1296_v47 = vadd.f32 %v1295_v35, %v1247_v10  ;;  %v3032_v55 = vpop.eup %3031 }
 0x168   : > { %v1249_v13 = vpop.f32.mrf.mxu1  ;;  %v1215_v10 = vpop.f32.mrf.mxu0 }
 0x169   : > { %3033 = vtanh.f32 %v1296_v47  ;;  %v1250_v33 = vadd.f32 %v1249_v13, %v1201_v28  ;;  %v1166_v18 = vpop.f32.mrf.mxu3  ;;  %v1164_v47 = vadd.f32 %v1163_v53, %v1115_v6  ;;  %v1211_v13 = vadd.f32 %v1210_v27, %v1162_v7 }
 0x16a   : > { %v1032_v7 = vadd.f32 %v3463_v30, %v3575_v40 }
 0x16e   : > { %v1298_v14 = vpop.f32.mrf.mxu2 }
 0x16f   : > { %v3034_v21 = vpop.eup %3033  ;;  %v1299_v38 = vadd.f32 %v1298_v14, %v1250_v33  ;;  %v1213_v14 = vadd.f32 %v1212_v25, %v1164_v47  ;;  %v1167_v33 = vadd.f32 %v1166_v18, %v3577_v42 }
 0x170   : > { %v1251_v31 = vpop.f32.mrf.mxu1  ;;  %v1345_v20 = vpack.c.bf16 %v3034_v21, %v3032_v55  ;;  %v1217_v36 = vpop.f32.mrf.mxu0 }
 0x171   : > { %v1252_v39 = vadd.f32 %v1251_v31, %v1203_v32  ;;  %3035 = vtanh.f32 %v1299_v38  ;;  %v1168_v21 = vpop.f32.mrf.mxu3  ;;  %v2963_v31 = vld [vmem:[%s4258_s5 + $0x8] sm:$0xff] }
 0x172   : > { %2721 = vmatmul.msk.bf16.gmra.mxu3 %vm1384_vm2, %v1345_v20  ;;  %v1120_v20 = vadd.f32 %v3588_v54, %v1071_v56  ;;  %1551 = vmatpush.bf16.msra.mxu0 %v2963_v31  ;;  %v1027_v54 = vadd.f32 %v3463_v30, %v3482_v44 }
 0x176   : > { %v1300_v46 = vpop.f32.mrf.mxu2 }
 0x177   : > { %v1301_v49 = vadd.f32 %v1300_v46, %v1252_v39  ;;  %v3036_v50 = vpop.eup %3035  ;;  %v1169_v46 = vadd.f32 %v1168_v21, %v1120_v20  ;;  %v3660_v20 = vld [vmem:[%s4257_s4] ss:$0 sm:$0xff] }
 0x178   : > { %v1254_v58 = vpop.f32.mrf.mxu1  ;;  %v1220_v27 = vpop.f32.mrf.mxu0 }
 0x179   : > { %3037 = vtanh.f32 %v1301_v49  ;;  %v1255_v60 = vadd.f32 %v1254_v58, %v1206_v22  ;;  %v1171_v38 = vpop.f32.mrf.mxu3  ;;  %v1216_v49 = vadd.f32 %v1215_v10, %v1167_v33  ;;  %v1218_v45 = vadd.f32 %v1217_v36, %v1169_v46  ;;  %v1624_v33 = vld [vmem:[%s4260_s7 + $0x18] sm:$0x1] }
 0x17a   : > { %v1076_v22 = vadd.f32 %v3594_v1, %v1027_v54  ;;  %v2962_v1 = vld [vmem:[%s4258_s5] sm:$0xff] }
 0x17b   : > { %1552 = vmatpush.bf16.msra.mxu0 %v2962_v1 }
 0x17c   : > { %v1125_v53 = vadd.f32 %v3600_v8, %v1076_v22 }
 0x17e   : > { %v1303_v51 = vpop.f32.mrf.mxu2 }
 0x17f   : > { %v3038_v11 = vpop.eup %3037  ;;  %v1304_v62 = vadd.f32 %v1303_v51, %v1255_v60 }
 0x180   : > { %v1256_v57 = vpop.f32.mrf.mxu1  ;;  %v1346_v59 = vpack.c.bf16 %v3038_v11, %v3036_v50 }
 0x181   : > { %v1257_v0 = vadd.f32 %v1256_v57, %v1208_v61  ;;  %3039 = vtanh.f32 %v1304_v62  ;;  %v1173_v11 = vpop.f32.mrf.mxu3  ;;  %v1172_v57 = vadd.f32 %v1171_v38, %v3592_v63 }
 0x182   : > { %2722 = vmatmul.msk.bf16.gmra.mxu3 %vm1384_vm2, %v1346_v59  ;;  %v1222_v59 = vpop.f32.mrf.mxu0  ;;  %v1174_v62 = vadd.f32 %v1173_v11, %v1125_v53 }
 0x184   : > { %v1223_v5 = vadd.f32 %v1222_v59, %v1174_v62 }
 0x186   : > { %v1305_v4 = vpop.f32.mrf.mxu2 }
 0x187   : > { %v1306_v34 = vadd.f32 %v1305_v4, %v1257_v0  ;;  %v3040_v29 = vpop.eup %3039  ;;  %v1221_v0 = vadd.f32 %v1220_v27, %v1172_v57 }
 0x188   : > { %v1259_v9 = vpop.f32.mrf.mxu1 }
 0x189   : > { %3041 = vtanh.f32 %v1306_v34  ;;  %v1260_v55 = vadd.f32 %v1259_v9, %v1211_v13  ;;  %v1176_v44 = vpop.f32.mrf.mxu3 }
 0x18a   : > { %v1225_v18 = vpop.f32.mrf.mxu0  ;;  %v1177_v47 = vadd.f32 %v1176_v44, %v3604_v16 }
 0x18c   : > { %v1226_v21 = vadd.f32 %v1225_v18, %v1177_v47 }
 0x18e   : > { %v1308_v12 = vpop.f32.mrf.mxu2 }
 0x18f   : > { %v3042_v35 = vpop.eup %3041  ;;  %v1309_v43 = vadd.f32 %v1308_v12, %v1260_v55  ;;  %v1081_v12 = vadd.f32 %v3606_v17, %v1032_v7 }
 0x190   : > { %v1261_v48 = vpop.f32.mrf.mxu1  ;;  %v1347_v15 = vpack.c.bf16 %v3042_v35, %v3040_v29 }
 0x191   : > { %v1262_v26 = vadd.f32 %v1261_v48, %v1213_v14  ;;  %3043 = vtanh.f32 %v1309_v43  ;;  %v1130_v35 = vadd.f32 %v3608_v19, %v1081_v12  ;;  %v1178_v13 = vpop.f32.mrf.mxu3 }
 0x192   : > { %2723 = vmatmul.msk.bf16.gmra.mxu3 %vm1384_vm2, %v1347_v15  ;;  %v1227_v43 = vpop.f32.mrf.mxu0 }
 0x193   : > { %v1179_v14 = vadd.f32 %v1178_v13, %v1130_v35 }
 0x195   : > { %v1228_v40 = vadd.f32 %v1227_v43, %v1179_v14  ;;  %v2965_v14 = vld [vmem:[%s4260_s7] sm:$0xff] }
 0x196   : > { %v1310_v23 = vpop.f32.mrf.mxu2 }
 0x197   : > { %v1311_v28 = vadd.f32 %v1310_v23, %v1262_v26  ;;  %v3044_v32 = vpop.eup %3043 }
 0x198   : > { %v1264_v24 = vpop.f32.mrf.mxu1 }
 0x199   : > { %3045 = vtanh.f32 %v1311_v28  ;;  %v1265_v3 = vadd.f32 %v1264_v24, %v1216_v49 }
 0x19e   : > { %v1313_v39 = vpop.f32.mrf.mxu2 }
 0x19f   : > { %v3046_v41 = vpop.eup %3045  ;;  %v1314_v37 = vadd.f32 %v1313_v39, %v1265_v3 }
 0x1a0   : > { %v1266_v58 = vpop.f32.mrf.mxu1  ;;  %v1348_v2 = vpack.c.bf16 %v3046_v41, %v3044_v32  ;;  %v1642_v32 = vunpack.c.l.b16 %v1624_v33  ;;  %v3702_v33 = vld [vmem:[%s4259_s6] ss:$0 sm:$0xff] }
 0x1a1   : > { %v1267_v50 = vadd.f32 %v1266_v58, %v1218_v45  ;;  %3047 = vtanh.f32 %v1314_v37 }
 0x1a2   : > { %2724 = vmatmul.msk.bf16.gmra.mxu3 %vm1384_vm2, %v1348_v2  ;;  %v1646_v39 = vpack.c.b16 %v1642_v32, %v1642_v32  ;;  %v1774_v32 = vld [vmem:[%s4262_s9 + $0xa8] sm:$0x11] }
 0x1a4   : > { %v1675_v49 = vsel %vm1409_vm0, %v1646_v39, 0  ;;  %v1865_v39 = vunpack.c.h.b16 %v1774_v32 }
 0x1a5   : > { %1681 = vmatpush.bf16.msrb.mxu1 %v1675_v49 }
 0x1a6   : > { %v1315_v51 = vpop.f32.mrf.mxu2 }
 0x1a7   : > { %v1316_v42 = vadd.f32 %v1315_v51, %v1267_v50  ;;  %v3048_v60 = vpop.eup %3047 }
 0x1a8   : > { %v1269_v52 = vpop.f32.mrf.mxu1 }
 0x1a9   : > { %3049 = vtanh.f32 %v1316_v42  ;;  %v1270_v9 = vadd.f32 %v1269_v52, %v1221_v0  ;;  %v2967_v52 = vld [vmem:[%s4260_s7 + $0x10] sm:$0xff] }
 0x1aa   : > { %1682 = vmatpush.bf16.msrb.mxu1 %v2967_v52 }
 0x1ae   : > { %v1318_v61 = vpop.f32.mrf.mxu2 }
 0x1af   : > { %v3050_v25 = vpop.eup %3049  ;;  %v1319_v8 = vadd.f32 %v1318_v61, %v1270_v9 }
 0x1b0   : > { %v1271_v4 = vpop.f32.mrf.mxu1  ;;  %v1349_v34 = vpack.c.bf16 %v3050_v25, %v3048_v60 }
 0x1b1   : > { %v1272_v63 = vadd.f32 %v1271_v4, %v1223_v5  ;;  %3051 = vtanh.f32 %v1319_v8  ;;  %v2966_v5 = vld [vmem:[%s4260_s7 + $0x8] sm:$0xff] }
 0x1b2   : > { %2725 = vmatmul.msk.bf16.gmra.mxu3 %vm1384_vm2, %v1349_v34  ;;  %1683 = vmatpush.bf16.msrb.mxu1 %v2966_v5 }
 0x1b6   : > { %v1320_v6 = vpop.f32.mrf.mxu2  ;;  %1684 = vmatpush.bf16.msrb.mxu1 %v2965_v14  ;;  %v2798_v14 = vld [vmem:[%s4262_s9 + $0x38] sm:$0xf] }
 0x1b7   : > { %v1321_v29 = vadd.f32 %v1320_v6, %v1272_v63  ;;  %v3052_v48 = vpop.eup %3051 }
 0x1b8   : > { %v1274_v10 = vpop.f32.mrf.mxu1 }
 0x1b9   : > { %3053 = vtanh.f32 %v1321_v29  ;;  %v1275_v23 = vadd.f32 %v1274_v10, %v1226_v21 }
 0x1be   : > { %v1323_v15 = vpop.f32.mrf.mxu2 }
 0x1bf   : > { %v3054_v55 = vpop.eup %3053  ;;  %v1324_v28 = vadd.f32 %v1323_v15, %v1275_v23 }
 0x1c0   : > { %v1350_v26 = vpack.c.bf16 %v3054_v55, %v3052_v48  ;;  %v1276_v30 = vpop.f32.mrf.mxu1 }
 0x1c1   : > { %v1277_v17 = vadd.f32 %v1276_v30, %v1228_v40  ;;  %3055 = vtanh.f32 %v1324_v28 }
 0x1c2   : > { %2726 = vmatmul.msk.bf16.gmra.mxu3 %vm1384_vm2, %v1350_v26 }
 0x1c6   : > { %v1325_v36 = vpop.f32.mrf.mxu2 }
 0x1c7   : > { %v1326_v24 = vadd.f32 %v1325_v36, %v1277_v17  ;;  %v3056_v16 = vpop.eup %3055 }
 0x1c9   : > { %3057 = vtanh.f32 %v1326_v24 }
 0x1cf   : > { %v3058_v19 = vpop.eup %3057 }
 0x1d0   : > { %v1351_v56 = vpack.c.bf16 %v3058_v19, %v3056_v16 }
 0x1d2   : > { %2727 = vmatmul.msk.bf16.gmra.mxu3 %vm1384_vm2, %v1351_v56 }
 0x1e5   : > { %v1422_v31 = vpop.f32.mrf.mxu3 }
 0x1e6   : > { %v1423_v38 = vadd.f32 %v3660_v20, %v1422_v31 }
 0x1e8   : > { %3059 = vtanh.f32 %v1423_v38  ;;  %v1864_v38 = vunpack.c.l.b16 %v1774_v32 }
 0x1ed   : > { %v1424_v41 = vpop.f32.mrf.mxu3 }
 0x1ee   : > { %v1425_v46 = vadd.f32 %v3660_v20, %v1424_v41  ;;  %v3060_v58 = vpop.eup %3059  ;;  %v1892_v41 = vpack.c.b16 %v1864_v38, %v1864_v38 }
 0x1f0   : > { %3061 = vtanh.f32 %v1425_v46  ;;  %v1893_v46 = vpack.c.b16 %v1865_v39, %v1865_v39 }
 0x1f5   : > { %v1427_v2 = vpop.f32.mrf.mxu3 }
 0x1f6   : > { %v3062_v27 = vpop.eup %3061  ;;  %v1428_v45 = vadd.f32 %v3660_v20, %v1427_v2  ;;  %v1945_v2 = vsel %vm1409_vm0, %v1892_v41, 0 }
 0x1f7   : > { %v1478_v3 = vpack.c.bf16 %v3062_v27, %v3060_v58  ;;  %v1948_v27 = vsel %vm1409_vm0, %v1893_v46, 0  ;;  %1969 = vmatpush.bf16.msrb.mxu2 %v1945_v2  ;;  %v2770_v2 = vld [vmem:[%s4262_s9] sm:$0xf] }
 0x1f8   : > { %3063 = vtanh.f32 %v1428_v45  ;;  %2018 = vmatpush.bf16.msrb.mxu3 %v1948_v27  ;;  %v2971_v27 = vld [vmem:[%s4262_s9 + $0x18] sm:$0xf0] }
 0x1f9   : > { %2740 = vmatmul.msk.bf16.vlgmr.msra.gmra.mxu0 %vm1384_vm2, %v1478_v3  ;;  %v3714_v3 = vld [vmem:[%s4262_s9 + $0xb0] sm:$0x11] }
 0x1fa   : > { %v1866_v45 = vunpack.c.l.b16 %v3714_v3 }
 0x1fd   : > { %v1429_v37 = vpop.f32.mrf.mxu3 }
 0x1fe   : > { %v1430_v50 = vadd.f32 %v3660_v20, %v1429_v37  ;;  %v3064_v51 = vpop.eup %3063  ;;  %v1894_v37 = vpack.c.b16 %v1866_v45, %v1866_v45  ;;  %v2968_v45 = vld [vmem:[%s4262_s9 + $0x4] sm:$0xf] }
 0x200   : > { %3065 = vtanh.f32 %v1430_v50 }
 0x205   : > { %v1432_v54 = vpop.f32.mrf.mxu3 }
 0x206   : > { %v3066_v42 = vpop.eup %3065  ;;  %v1433_v22 = vadd.f32 %v3660_v20, %v1432_v54  ;;  %v1951_v54 = vsel %vm1409_vm0, %v1894_v37, 0  ;;  %v2771_v37 = vor.u32 %v2971_v27, %v2770_v2 }
 0x207   : > { %v1479_v11 = vpack.c.bf16 %v3066_v42, %v3064_v51  ;;  %2067 = vmatpush.bf16.msrb.mxu0 %v1951_v54  ;;  %v2972_v54 = vld [vmem:[%s4262_s9 + $0x20] sm:$0xf0] }
 0x208   : > { %3067 = vtanh.f32 %v1433_v22 }
 0x209   : > { %2741 = vmatmul.msk.bf16.gmra.mxu0 %vm1384_vm2, %v1479_v11 }
 0x20d   : > { %v1434_v53 = vpop.f32.mrf.mxu3 }
 0x20e   : > { %v1435_v57 = vadd.f32 %v3660_v20, %v1434_v53  ;;  %v3068_v59 = vpop.eup %3067 }
 0x210   : > { %3069 = vtanh.f32 %v1435_v57 }
 0x215   : > { %v1437_v60 = vpop.f32.mrf.mxu3 }
 0x216   : > { %v3070_v61 = vpop.eup %3069  ;;  %v1438_v62 = vadd.f32 %v3660_v20, %v1437_v60 }
 0x217   : > { %v1480_v25 = vpack.c.bf16 %v3070_v61, %v3068_v59 }
 0x218   : > { %3071 = vtanh.f32 %v1438_v62  ;;  %v2985_v62 = vld [vmem:[%s4262_s9 + $0x88] sm:$0xf0] }
 0x219   : > { %2742 = vmatmul.msk.bf16.gmra.mxu0 %vm1384_vm2, %v1480_v25  ;;  %v2826_v25 = vld [vmem:[%s4262_s9 + $0x70] sm:$0xf] }
 0x21d   : > { %v1439_v0 = vpop.f32.mrf.mxu3 }
 0x21e   : > { %v1440_v4 = vadd.f32 %v3660_v20, %v1439_v0  ;;  %v3072_v34 = vpop.eup %3071  ;;  %v2982_v0 = vld [vmem:[%s4262_s9 + $0x74] sm:$0xf] }
 0x220   : > { %3073 = vtanh.f32 %v1440_v4  ;;  %v2827_v4 = vor.u32 %v2985_v62, %v2826_v25 }
 0x222   : > { %1970 = vmatpush.bf16.msrb.mxu2 %v2827_v4 }
 0x225   : > { %v1442_v44 = vpop.f32.mrf.mxu3 }
 0x226   : > { %v3074_v9 = vpop.eup %3073  ;;  %v1443_v8 = vadd.f32 %v3660_v20, %v1442_v44 }
 0x227   : > { %v1481_v1 = vpack.c.bf16 %v3074_v9, %v3072_v34  ;;  %v2828_v34 = vld [vmem:[%s4262_s9 + $0x8c] sm:$0xf0] }
 0x228   : > { %3075 = vtanh.f32 %v1443_v8  ;;  %v2831_v9 = vor.u32 %v2982_v0, %v2828_v34  ;;  %v2834_v8 = vld [vmem:[%s4262_s9 + $0x78] sm:$0xf]  ;;  %v2983_v34 = vld [vmem:[%s4262_s9 + $0x7c] sm:$0xf] }
 0x229   : > { %2743 = vmatmul.msk.bf16.gmra.mxu0 %vm1384_vm2, %v1481_v1 }
 0x22a   : > { %2019 = vmatpush.bf16.msrb.mxu3 %v2831_v9 }
 0x22d   : > { %v1444_v63 = vpop.f32.mrf.mxu3 }
 0x22e   : > { %v1445_v18 = vadd.f32 %v3660_v20, %v1444_v63  ;;  %v3076_v6 = vpop.eup %3075  ;;  %v2986_v63 = vld [vmem:[%s4262_s9 + $0x90] sm:$0xf0] }
 0x230   : > { %3077 = vtanh.f32 %v1445_v18  ;;  %v2835_v18 = vor.u32 %v2986_v63, %v2834_v8  ;;  %v2808_v8 = vld [vmem:[%s4262_s9 + $0x5c] sm:$0xf0] }
 0x232   : > { %2068 = vmatpush.bf16.msrb.mxu0 %v2835_v18  ;;  %v2969_v18 = vld [vmem:[%s4262_s9 + $0xc] sm:$0xf] }
 0x235   : > { %v1447_v7 = vpop.f32.mrf.mxu3 }
 0x236   : > { %v3078_v29 = vpop.eup %3077  ;;  %v1448_v12 = vadd.f32 %v3660_v20, %v1447_v7 }
 0x237   : > { %v1482_v10 = vpack.c.bf16 %v3078_v29, %v3076_v6 }
 0x238   : > { %3079 = vtanh.f32 %v1448_v12 }
 0x239   : > { %2744 = vmatmul.msk.bf16.gmra.mxu0 %vm1384_vm2, %v1482_v10 }
 0x23d   : > { %v1449_v35 = vpop.f32.mrf.mxu3 }
 0x23e   : > { %v1450_v47 = vadd.f32 %v3660_v20, %v1449_v35  ;;  %v3080_v13 = vpop.eup %3079 }
 0x240   : > { %3081 = vtanh.f32 %v1450_v47 }
 0x245   : > { %v1452_v48 = vpop.f32.mrf.mxu3 }
 0x246   : > { %v3082_v15 = vpop.eup %3081  ;;  %v1453_v21 = vadd.f32 %v3660_v20, %v1452_v48 }
 0x247   : > { %v1483_v55 = vpack.c.bf16 %v3082_v15, %v3080_v13 }
 0x248   : > { %3083 = vtanh.f32 %v1453_v21  ;;  %v2978_v21 = vld [vmem:[%s4262_s9 + $0x50] sm:$0xf0] }
 0x249   : > { %2745 = vmatmul.msk.bf16.gmra.mxu0 %vm1384_vm2, %v1483_v55 }
 0x24d   : > { %v1454_v43 = vpop.f32.mrf.mxu3 }
 0x24e   : > { %v1455_v26 = vadd.f32 %v3660_v20, %v1454_v43  ;;  %v3084_v23 = vpop.eup %3083  ;;  %v2975_v43 = vld [vmem:[%s4262_s9 + $0x3c] sm:$0xf] }
 0x250   : > { %3085 = vtanh.f32 %v1455_v26  ;;  %v2799_v26 = vor.u32 %v2978_v21, %v2798_v14  ;;  %v3822_v21 = vld [vmem:[%s4261_s8] ss:$0 sm:$0xff] }
 0x252   : > { %1971 = vmatpush.bf16.msrb.mxu2 %v2799_v26 }
 0x255   : > { %v1457_v30 = vpop.f32.mrf.mxu3 }
 0x256   : > { %v3086_v40 = vpop.eup %3085  ;;  %v1458_v17 = vadd.f32 %v3660_v20, %v1457_v30  ;;  %1972 = vmatpush.bf16.msrb.mxu2 %v2771_v37  ;;  %v2850_v37 = vld [vmem:[%s4262_s9 + $0x88] sm:$0xf] }
 0x257   : > { %v1484_v28 = vpack.c.bf16 %v3086_v40, %v3084_v23  ;;  %v2800_v23 = vld [vmem:[%s4262_s9 + $0x54] sm:$0xf0] }
 0x258   : > { %3087 = vtanh.f32 %v1458_v17  ;;  %v2803_v40 = vor.u32 %v2975_v43, %v2800_v23  ;;  %v1777_v43 = vld [vmem:[%s4262_s9 + $0xc0] sm:$0x1] }
 0x259   : > { %2746 = vmatmul.msk.bf16.gmra.mxu0 %vm1384_vm2, %v1484_v28  ;;  %v1870_v26 = vunpack.c.l.b16 %v1777_v43 }
 0x25a   : > { %2020 = vmatpush.bf16.msrb.mxu3 %v2803_v40 }
 0x25b   : > { %v1898_v23 = vpack.c.b16 %v1870_v26, %v1870_v26 }
 0x25d   : > { %v1459_v36 = vpop.f32.mrf.mxu3  ;;  %v1963_v40 = vsel %vm1409_vm0, %v1898_v23, 0 }
 0x25e   : > { %v1460_v24 = vadd.f32 %v3660_v20, %v1459_v36  ;;  %v3088_v16 = vpop.eup %3087  ;;  %v2806_v36 = vld [vmem:[%s4262_s9 + $0x40] sm:$0xf] }
 0x260   : > { %3089 = vtanh.f32 %v1460_v24  ;;  %v2979_v24 = vld [vmem:[%s4262_s9 + $0x58] sm:$0xf0] }
 0x266   : > { %v3090_v19 = vpop.eup %3089 }
 0x267   : > { %v1485_v56 = vpack.c.bf16 %v3090_v19, %v3088_v16  ;;  %v2807_v16 = vor.u32 %v2979_v24, %v2806_v36 }
 0x269   : > { %2747 = vmatmul.msk.bf16.gmra.mxu0 %vm1384_vm2, %v1485_v56 }
 0x26a   : > { %2069 = vmatpush.bf16.msrb.mxu0 %v2807_v16 }
 0x276   : > { %v1554_v31 = vpop.f32.mrf.mxu0 }
 0x277   : > { %v1555_v20 = vadd.f32 %v3702_v33, %v1554_v31 }
 0x279   : > { %3091 = vtanh.f32 %v1555_v20 }
 0x27e   : > { %v1556_v49 = vpop.f32.mrf.mxu0 }
 0x27f   : > { %v1557_v58 = vadd.f32 %v3702_v33, %v1556_v49  ;;  %v3092_v50 = vpop.eup %3091 }
 0x281   : > { %3093 = vtanh.f32 %v1557_v58 }
 0x286   : > { %v1559_v51 = vpop.f32.mrf.mxu0 }
 0x287   : > { %v3094_v42 = vpop.eup %3093  ;;  %v1560_v52 = vadd.f32 %v3702_v33, %v1559_v51  ;;  %v2778_v51 = vld [vmem:[%s4262_s9 + $0x8] sm:$0xf] }
 0x288   : > { %v1610_v11 = vpack.c.bf16 %v3094_v42, %v3092_v50  ;;  %v2772_v50 = vld [vmem:[%s4262_s9 + $0x1c] sm:$0xf0] }
 0x289   : > { %3095 = vtanh.f32 %v1560_v52  ;;  %v2779_v52 = vor.u32 %v2972_v54, %v2778_v51 }
 0x28a   : > { %2760 = vmatmul.msk.bf16.vlgmr.msrb.gmra.mxu1 %vm1384_vm2, %v1610_v11  ;;  %v2775_v11 = vor.u32 %v2968_v45, %v2772_v50  ;;  %v2988_v50 = vld [vmem:[%s4262_s9 + $0xa0] sm:$0xf0] }
 0x28b   : > { %2070 = vmatpush.bf16.msrb.mxu0 %v2779_v52  ;;  %v2851_v51 = vor.u32 %v2988_v50, %v2850_v37 }
 0x28c   : > { %2021 = vmatpush.bf16.msrb.mxu3 %v2775_v11 }
 0x28e   : > { %v1561_v22 = vpop.f32.mrf.mxu0 }
 0x28f   : > { %v1562_v53 = vadd.f32 %v3702_v33, %v1561_v22  ;;  %v3096_v57 = vpop.eup %3095  ;;  %2263 = vmatpush.bf16.msra.mxu0 %v1963_v40 }
 0x291   : > { %3097 = vtanh.f32 %v1562_v53 }
 0x293   : > { %2264 = vmatpush.bf16.msra.mxu0 %v2851_v51 }
 0x296   : > { %v1564_v59 = vpop.f32.mrf.mxu0 }
 0x297   : > { %v3098_v60 = vpop.eup %3097  ;;  %v1565_v44 = vadd.f32 %v3702_v33, %v1564_v59 }
 0x298   : > { %v1611_v61 = vpack.c.bf16 %v3098_v60, %v3096_v57 }
 0x299   : > { %3099 = vtanh.f32 %v1565_v44  ;;  %v2836_v44 = vld [vmem:[%s4262_s9 + $0x94] sm:$0xf0] }
 0x29a   : > { %2761 = vmatmul.msk.bf16.gmra.mxu1 %vm1384_vm2, %v1611_v61  ;;  %v1867_v61 = vunpack.c.h.b16 %v3714_v3 }
 0x29c   : > { %v1895_v62 = vpack.c.b16 %v1867_v61, %v1867_v61  ;;  %v2977_v61 = vld [vmem:[%s4262_s9 + $0x4c] sm:$0xf] }
 0x29e   : > { %v1566_v1 = vpop.f32.mrf.mxu0  ;;  %v1954_v0 = vsel %vm1409_vm0, %v1895_v62, 0 }
 0x29f   : > { %v1567_v5 = vadd.f32 %v3702_v33, %v1566_v1  ;;  %v3100_v6 = vpop.eup %3099  ;;  %2116 = vmatpush.bf16.msra.mxu1 %v1954_v0  ;;  %v2839_v1 = vor.u32 %v2983_v34, %v2836_v44  ;;  %v2816_v0 = vld [vmem:[%s4262_s9 + $0x64] sm:$0xf0] }
 0x2a1   : > { %3101 = vtanh.f32 %v1567_v5  ;;  %v2976_v5 = vld [vmem:[%s4262_s9 + $0x44] sm:$0xf] }
 0x2a2   : > { %v2811_v63 = vor.u32 %v2976_v5, %v2808_v8  ;;  %v2822_v8 = vld [vmem:[%s4262_s9 + $0x50] sm:$0xf] }
 0x2a3   : > { %2117 = vmatpush.bf16.msra.mxu1 %v2839_v1 }
 0x2a6   : > { %v1569_v7 = vpop.f32.mrf.mxu0 }
 0x2a7   : > { %v3102_v29 = vpop.eup %3101  ;;  %v1570_v12 = vadd.f32 %v3702_v33, %v1569_v7  ;;  %2118 = vmatpush.bf16.msra.mxu1 %v2811_v63  ;;  %v2981_v63 = vld [vmem:[%s4262_s9 + $0x68] sm:$0xf0] }
 0x2a8   : > { %v1612_v10 = vpack.c.bf16 %v3102_v29, %v3100_v6 }
 0x2a9   : > { %3103 = vtanh.f32 %v1570_v12  ;;  %v1776_v12 = vld [vmem:[%s4262_s9 + $0xb8] sm:$0x11] }
 0x2aa   : > { %2762 = vmatmul.msk.bf16.gmra.mxu1 %vm1384_vm2, %v1612_v10 }
 0x2ae   : > { %v1571_v35 = vpop.f32.mrf.mxu0 }
 0x2af   : > { %v1572_v47 = vadd.f32 %v3702_v33, %v1571_v35  ;;  %v3104_v13 = vpop.eup %3103  ;;  %v1868_v35 = vunpack.c.l.b16 %v1776_v12 }
 0x2b1   : > { %3105 = vtanh.f32 %v1572_v47  ;;  %v1869_v47 = vunpack.c.h.b16 %v1776_v12 }
 0x2b6   : > { %v1574_v48 = vpop.f32.mrf.mxu0 }
 0x2b7   : > { %v3106_v15 = vpop.eup %3105  ;;  %v1575_v30 = vadd.f32 %v3702_v33, %v1574_v48  ;;  %v1897_v48 = vpack.c.b16 %v1869_v47, %v1869_v47  ;;  %v2786_v47 = vld [vmem:[%s4262_s9 + $0x10] sm:$0xf] }
 0x2b8   : > { %v1613_v55 = vpack.c.bf16 %v3106_v15, %v3104_v13  ;;  %v1896_v13 = vpack.c.b16 %v1868_v35, %v1868_v35 }
 0x2b9   : > { %3107 = vtanh.f32 %v1575_v30 }
 0x2ba   : > { %2763 = vmatmul.msk.bf16.gmra.mxu1 %vm1384_vm2, %v1613_v55  ;;  %v1957_v15 = vsel %vm1409_vm0, %v1896_v13, 0  ;;  %v1960_v55 = vsel %vm1409_vm0, %v1897_v48, 0  ;;  %v2973_v13 = vld [vmem:[%s4262_s9 + $0x28] sm:$0xf0]  ;;  %v2970_v48 = vld [vmem:[%s4262_s9 + $0x14] sm:$0xf] }
 0x2bb   : > { %2165 = vmatpush.bf16.msra.mxu2 %v1957_v15  ;;  %2214 = vmatpush.bf16.msra.mxu3 %v1960_v55  ;;  %v2787_v55 = vor.u32 %v2973_v13, %v2786_v47 }
 0x2be   : > { %v1576_v28 = vpop.f32.mrf.mxu0 }
 0x2bf   : > { %v1577_v17 = vadd.f32 %v3702_v33, %v1576_v28  ;;  %v3108_v19 = vpop.eup %3107 }
 0x2c1   : > { %3109 = vtanh.f32 %v1577_v17 }
 0x2c6   : > { %v1579_v56 = vpop.f32.mrf.mxu0 }
 0x2c7   : > { %v3110_v31 = vpop.eup %3109  ;;  %v1580_v38 = vadd.f32 %v3702_v33, %v1579_v56  ;;  %v2842_v56 = vld [vmem:[%s4262_s9 + $0x80] sm:$0xf] }
 0x2c8   : > { %v1614_v32 = vpack.c.bf16 %v3110_v31, %v3108_v19  ;;  %v2987_v31 = vld [vmem:[%s4262_s9 + $0x98] sm:$0xf0] }
 0x2c9   : > { %3111 = vtanh.f32 %v1580_v38 }
 0x2ca   : > { %2764 = vmatmul.msk.bf16.gmra.mxu1 %vm1384_vm2, %v1614_v32  ;;  %v2984_v32 = vld [vmem:[%s4262_s9 + $0x84] sm:$0xf] }
 0x2ce   : > { %v1581_v39 = vpop.f32.mrf.mxu0 }
 0x2cf   : > { %v1582_v20 = vadd.f32 %v3702_v33, %v1581_v39  ;;  %v3112_v41 = vpop.eup %3111  ;;  %v2843_v39 = vor.u32 %v2987_v31, %v2842_v56 }
 0x2d1   : > { %3113 = vtanh.f32 %v1582_v20  ;;  %v2844_v20 = vld [vmem:[%s4262_s9 + $0x9c] sm:$0xf0]  ;;  %2166 = vmatpush.bf16.msra.mxu2 %v2843_v39 }
 0x2d6   : > { %v1584_v46 = vpop.f32.mrf.mxu0 }
 0x2d7   : > { %v3114_v49 = vpop.eup %3113  ;;  %v1585_v42 = vadd.f32 %v3702_v33, %v1584_v46 }
 0x2d8   : > { %v1615_v58 = vpack.c.bf16 %v3114_v49, %v3112_v41  ;;  %v2847_v41 = vor.u32 %v2984_v32, %v2844_v20 }
 0x2d9   : > { %3115 = vtanh.f32 %v1585_v42 }
 0x2da   : > { %2765 = vmatmul.msk.bf16.gmra.mxu1 %vm1384_vm2, %v1615_v58  ;;  %2215 = vmatpush.bf16.msra.mxu3 %v2847_v41 }
 0x2de   : > { %v1586_v22 = vpop.f32.mrf.mxu0 }
 0x2df   : > { %v1587_v53 = vadd.f32 %v3702_v33, %v1586_v22  ;;  %v3116_v57 = vpop.eup %3115 }
 0x2e1   : > { %3117 = vtanh.f32 %v1587_v53 }
 0x2e6   : > { %v1589_v59 = vpop.f32.mrf.mxu0 }
 0x2e7   : > { %v3118_v60 = vpop.eup %3117  ;;  %v1590_v4 = vadd.f32 %v3702_v33, %v1589_v59  ;;  %v2814_v59 = vld [vmem:[%s4262_s9 + $0x48] sm:$0xf] }
 0x2e8   : > { %v1616_v25 = vpack.c.bf16 %v3118_v60, %v3116_v57  ;;  %v2980_v60 = vld [vmem:[%s4262_s9 + $0x60] sm:$0xf0] }
 0x2e9   : > { %3119 = vtanh.f32 %v1590_v4  ;;  %v2815_v62 = vor.u32 %v2980_v60, %v2814_v59  ;;  %v2819_v4 = vor.u32 %v2977_v61, %v2816_v0 }
 0x2ea   : > { %2766 = vmatmul.msk.bf16.gmra.mxu1 %vm1384_vm2, %v1616_v25 }
 0x2eb   : > { %2167 = vmatpush.bf16.msra.mxu2 %v2815_v62  ;;  %2216 = vmatpush.bf16.msra.mxu3 %v2819_v4 }
 0x2ee   : > { %v1591_v9 = vpop.f32.mrf.mxu0 }
 0x2ef   : > { %v1592_v3 = vadd.f32 %v3702_v33, %v1591_v9  ;;  %v2780_v33 = vld [vmem:[%s4262_s9 + $0x24] sm:$0xf0]  ;;  %v3120_v6 = vpop.eup %3119  ;;  %2168 = vmatpush.bf16.msra.mxu2 %v2787_v55 }
 0x2f0   : > { %v2783_v7 = vor.u32 %v2969_v18, %v2780_v33  ;;  %v2823_v18 = vor.u32 %v2981_v63, %v2822_v8 }
 0x2f1   : > { %3121 = vtanh.f32 %v1592_v3 }
 0x2f2   : > { %2119 = vmatpush.bf16.msra.mxu1 %v2783_v7  ;;  %2265 = vmatpush.bf16.msra.mxu0 %v2823_v18 }
 0x2f7   : > { %v3122_v29 = vpop.eup %3121 }
 0x2f8   : > { %v1617_v10 = vpack.c.bf16 %v3122_v29, %v3120_v6 }
 0x2fa   : > { %2767 = vmatmul.msk.bf16.gmra.mxu1 %vm1384_vm2, %v1617_v10 }
 0x307   : > { %v1686_v14 = vpop.f32.mrf.mxu1 }
 0x308   : > { %v1687_v30 = vadd.f32 %v3822_v21, %v1686_v14  ;;  %v2788_v14 = vld [vmem:[%s4262_s9 + $0x2c] sm:$0xf0] }
 0x309   : > { %v2791_v43 = vor.u32 %v2970_v48, %v2788_v14 }
 0x30a   : > { %3123 = vtanh.f32 %v1687_v30 }
 0x30b   : > { %2217 = vmatpush.bf16.msra.mxu3 %v2791_v43 }
 0x30f   : > { %v1688_v28 = vpop.f32.mrf.mxu1 }
 0x310   : > { %v1689_v17 = vadd.f32 %v3822_v21, %v1688_v28  ;;  %v3124_v36 = vpop.eup %3123 }
 0x312   : > { %3125 = vtanh.f32 %v1689_v17 }
 0x317   : > { %v1691_v24 = vpop.f32.mrf.mxu1 }
 0x318   : > { %v3126_v16 = vpop.eup %3125  ;;  %v1692_v38 = vadd.f32 %v3822_v21, %v1691_v24  ;;  %v2974_v24 = vld [vmem:[%s4262_s9 + $0x30] sm:$0xf0] }
 0x319   : > { %v3830_v19 = vpack.c.bf16 %v3126_v16, %v3124_v36  ;;  %v2794_v36 = vld [vmem:[%s4262_s9 + $0x18] sm:$0xf] }
 0x31a   : > { %3127 = vtanh.f32 %v1692_v38  ;;  %v2795_v16 = vor.u32 %v2974_v24, %v2794_v36 }
 0x31b   : > { %2852 = vmatmul.msk.bf16.vlgmr.msrb.gmra.mxu2 %vm1384_vm2, %v3830_v19  ;;  %2860 = vmatmul.msk.bf16.vlgmr.msrb.gmra.mxu3 %vm1384_vm2, %v3830_v19 }
 0x31c   : > { %2868 = vmatmul.msk.bf16.vlgmr.msrb.gmra.mxu0 %vm1384_vm2, %v3830_v19  ;;  %2876 = vmatmul.msk.bf16.vlgmr.msra.gmra.mxu1 %vm1384_vm2, %v3830_v19 }
 0x31d   : > { %2266 = vmatpush.bf16.msra.mxu0 %v2795_v16 }
 0x31f   : > { %v1693_v46 = vpop.f32.mrf.mxu1 }
 0x320   : > { %v1694_v49 = vadd.f32 %v3822_v21, %v1693_v46  ;;  %v3128_v58 = vpop.eup %3127 }
 0x322   : > { %3129 = vtanh.f32 %v1694_v49 }
 0x327   : > { %v1696_v2 = vpop.f32.mrf.mxu1 }
 0x328   : > { %v3130_v27 = vpop.eup %3129  ;;  %v1697_v54 = vadd.f32 %v3822_v21, %v1696_v2 }
 0x329   : > { %v3854_v45 = vpack.c.bf16 %v3130_v27, %v3128_v58 }
 0x32a   : > { %3131 = vtanh.f32 %v1697_v54 }
 0x32b   : > { %2853 = vmatmul.msk.bf16.gmra.mxu2 %vm1384_vm2, %v3854_v45  ;;  %2861 = vmatmul.msk.bf16.gmra.mxu3 %vm1384_vm2, %v3854_v45 }
 0x32c   : > { %2869 = vmatmul.msk.bf16.gmra.mxu0 %vm1384_vm2, %v3854_v45  ;;  %2877 = vmatmul.msk.bf16.gmra.mxu1 %vm1384_vm2, %v3854_v45 }
 0x32f   : > { %v1698_v42 = vpop.f32.mrf.mxu1 }
 0x330   : > { %v1699_v11 = vadd.f32 %v3822_v21, %v1698_v42  ;;  %v3132_v52 = vpop.eup %3131 }
 0x332   : > { %3133 = vtanh.f32 %v1699_v11 }
 0x337   : > { %v1701_v22 = vpop.f32.mrf.mxu1 }
 0x338   : > { %v3134_v53 = vpop.eup %3133  ;;  %v1702_v25 = vadd.f32 %v3822_v21, %v1701_v22 }
 0x339   : > { %v3872_v57 = vpack.c.bf16 %v3134_v53, %v3132_v52 }
 0x33a   : > { %3135 = vtanh.f32 %v1702_v25 }
 0x33b   : > { %2854 = vmatmul.msk.bf16.gmra.mxu2 %vm1384_vm2, %v3872_v57  ;;  %2862 = vmatmul.msk.bf16.gmra.mxu3 %vm1384_vm2, %v3872_v57 }
 0x33c   : > { %2870 = vmatmul.msk.bf16.gmra.mxu0 %vm1384_vm2, %v3872_v57  ;;  %2878 = vmatmul.msk.bf16.gmra.mxu1 %vm1384_vm2, %v3872_v57 }
 0x33f   : > { %v1703_v34 = vpop.f32.mrf.mxu1 }
 0x340   : > { %v1704_v44 = vadd.f32 %v3822_v21, %v1703_v34  ;;  %v3136_v9 = vpop.eup %3135 }
 0x342   : > { %3137 = vtanh.f32 %v1704_v44 }
 0x347   : > { %v1706_v1 = vpop.f32.mrf.mxu1 }
 0x348   : > { %v3138_v3 = vpop.eup %3137  ;;  %v1707_v33 = vadd.f32 %v3822_v21, %v1706_v1 }
 0x349   : > { %v3896_v5 = vpack.c.bf16 %v3138_v3, %v3136_v9 }
 0x34a   : > { %3139 = vtanh.f32 %v1707_v33 }
 0x34b   : > { %2855 = vmatmul.msk.bf16.gmra.mxu2 %vm1384_vm2, %v3896_v5  ;;  %2863 = vmatmul.msk.bf16.gmra.mxu3 %vm1384_vm2, %v3896_v5 }
 0x34c   : > { %2871 = vmatmul.msk.bf16.gmra.mxu0 %vm1384_vm2, %v3896_v5  ;;  %2879 = vmatmul.msk.bf16.gmra.mxu1 %vm1384_vm2, %v3896_v5 }
 0x34f   : > { %v1708_v6 = vpop.f32.mrf.mxu1 }
 0x350   : > { %v1709_v7 = vadd.f32 %v3822_v21, %v1708_v6  ;;  %v3140_v29 = vpop.eup %3139 }
 0x352   : > { %3141 = vtanh.f32 %v1709_v7 }
 0x357   : > { %v1711_v10 = vpop.f32.mrf.mxu1 }
 0x358   : > { %v3142_v12 = vpop.eup %3141  ;;  %v1712_v15 = vadd.f32 %v3822_v21, %v1711_v10 }
 0x359   : > { %v3914_v35 = vpack.c.bf16 %v3142_v12, %v3140_v29 }
 0x35a   : > { %3143 = vtanh.f32 %v1712_v15 }
 0x35b   : > { %2856 = vmatmul.msk.bf16.gmra.mxu2 %vm1384_vm2, %v3914_v35  ;;  %2864 = vmatmul.msk.bf16.gmra.mxu3 %vm1384_vm2, %v3914_v35 }
 0x35c   : > { %2872 = vmatmul.msk.bf16.gmra.mxu0 %vm1384_vm2, %v3914_v35  ;;  %2880 = vmatmul.msk.bf16.gmra.mxu1 %vm1384_vm2, %v3914_v35 }
 0x35f   : > { %v1713_v26 = vpop.f32.mrf.mxu1 }
 0x360   : > { %v1714_v23 = vadd.f32 %v3822_v21, %v1713_v26  ;;  %v3144_v30 = vpop.eup %3143 }
 0x362   : > { %3145 = vtanh.f32 %v1714_v23 }
 0x367   : > { %v1716_v40 = vpop.f32.mrf.mxu1 }
 0x368   : > { %v3146_v28 = vpop.eup %3145  ;;  %v1717_v56 = vadd.f32 %v3822_v21, %v1716_v40 }
 0x369   : > { %v3938_v17 = vpack.c.bf16 %v3146_v28, %v3144_v30 }
 0x36a   : > { %3147 = vtanh.f32 %v1717_v56 }
 0x36b   : > { %2857 = vmatmul.msk.bf16.gmra.mxu2 %vm1384_vm2, %v3938_v17  ;;  %2865 = vmatmul.msk.bf16.gmra.mxu3 %vm1384_vm2, %v3938_v17 }
 0x36c   : > { %2873 = vmatmul.msk.bf16.gmra.mxu0 %vm1384_vm2, %v3938_v17  ;;  %2881 = vmatmul.msk.bf16.gmra.mxu1 %vm1384_vm2, %v3938_v17 }
 0x36f   : > { %v1718_v31 = vpop.f32.mrf.mxu1 }
 0x370   : > { %v1719_v32 = vadd.f32 %v3822_v21, %v1718_v31  ;;  %v3148_v38 = vpop.eup %3147 }
 0x372   : > { %3149 = vtanh.f32 %v1719_v32 }
 0x377   : > { %v1721_v39 = vpop.f32.mrf.mxu1 }
 0x378   : > { %v3150_v20 = vpop.eup %3149  ;;  %v1722_v46 = vadd.f32 %v3822_v21, %v1721_v39 }
 0x379   : > { %v3956_v41 = vpack.c.bf16 %v3150_v20, %v3148_v38 }
 0x37a   : > { %3151 = vtanh.f32 %v1722_v46 }
 0x37b   : > { %2858 = vmatmul.msk.bf16.gmra.mxu2 %vm1384_vm2, %v3956_v41  ;;  %2866 = vmatmul.msk.bf16.gmra.mxu3 %vm1384_vm2, %v3956_v41 }
 0x37c   : > { %2874 = vmatmul.msk.bf16.gmra.mxu0 %vm1384_vm2, %v3956_v41  ;;  %2882 = vmatmul.msk.bf16.gmra.mxu1 %vm1384_vm2, %v3956_v41 }
 0x37f   : > { %v1723_v49 = vpop.f32.mrf.mxu1 }
 0x380   : > { %v1724_v58 = vadd.f32 %v3822_v21, %v1723_v49  ;;  %v3152_v2 = vpop.eup %3151  ;;  %v3981_v21 = vld [vmem:[%s4263_s10] sm:$0x7f] }
 0x381   : > { %v3984_v50 = vperm.slane %v3981_v21, 2  ;;  %v3987_v51 = vperm.slane %v3981_v21, 3  ;;  %v4002_v22 = vperm.slane %v3981_v21, 0  ;;  %v4005_v53 = vperm.slane %v3981_v21, 1 }
 0x382   : > { %3153 = vtanh.f32 %v1724_v58 }
 0x388   : > { %v3154_v27 = vpop.eup %3153 }
 0x389   : > { %v3968_v37 = vpack.c.bf16 %v3154_v27, %v3152_v2 }
 0x38b   : > { %2859 = vmatmul.msk.bf16.gmra.mxu2 %vm1384_vm2, %v3968_v37  ;;  %2867 = vmatmul.msk.bf16.gmra.mxu3 %vm1384_vm2, %v3968_v37 }
 0x38c   : > { %2875 = vmatmul.msk.bf16.gmra.mxu0 %vm1384_vm2, %v3968_v37  ;;  %2883 = vmatmul.msk.bf16.gmra.mxu1 %vm1384_vm2, %v3968_v37 }
 0x399   : > { %v2072_v54 = vpop.f32.mrf.mxu0  ;;  %v2121_v42 = vpop.f32.mrf.mxu1 }
 0x39a   : > { %v2073_v11 = vadd.f32 %v2072_v54, %v3984_v50  ;;  %v2122_v52 = vadd.f32 %v2121_v42, %v3987_v51 }
 0x39b   : > { %2884 = vmatmul.msk.bf16.vlgmr.msra.gmra.mxu2 %vm1384_vm2, %v3830_v19  ;;  %2892 = vmatmul.msk.bf16.vlgmr.msra.gmra.mxu3 %vm1384_vm2, %v3830_v19 }
 0x39c   : > { %v2309_v59 = vpack.c.bf16 %v2122_v52, %v2073_v11  ;;  %2900 = vmatmul.msk.bf16.vlgmr.msra.gmra.mxu0 %vm1384_vm2, %v3830_v19 }
 0x39e   : > { %2373 = vst [vmem:[%s3995_s19 + $0x8] sm:$0xff] %v2309_v59  ;;  %v1974_v60 = vpop.f32.mrf.mxu2  ;;  %v2023_v61 = vpop.f32.mrf.mxu3 }
 0x39f   : > { %v1975_v25 = vadd.f32 %v1974_v60, %v4002_v22  ;;  %v2024_v62 = vadd.f32 %v2023_v61, %v4005_v53 }
 0x3a1   : > { %v2308_v0 = vpack.c.bf16 %v2024_v62, %v1975_v25  ;;  %v2074_v4 = vpop.f32.mrf.mxu0  ;;  %v2123_v34 = vpop.f32.mrf.mxu1 }
 0x3a2   : > { %v2075_v44 = vadd.f32 %v2074_v4, %v3984_v50  ;;  %v2124_v9 = vadd.f32 %v2123_v34, %v3987_v51 }
 0x3a3   : > { %2372 = vst [vmem:[%s3995_s19] sm:$0xff] %v2308_v0 }
 0x3a4   : > { %v2313_v1 = vpack.c.bf16 %v2124_v9, %v2075_v44 }
 0x3a6   : > { %2378 = vst [vmem:[%s3995_s19 + $0x24] sm:$0xff] %v2313_v1  ;;  %v1976_v19 = vpop.f32.mrf.mxu2  ;;  %v2025_v3 = vpop.f32.mrf.mxu3 }
 0x3a7   : > { %v1977_v8 = vadd.f32 %v1976_v19, %v4002_v22  ;;  %v2026_v63 = vadd.f32 %v2025_v3, %v4005_v53 }
 0x3a9   : > { %v2312_v18 = vpack.c.bf16 %v2026_v63, %v1977_v8  ;;  %v2077_v33 = vpop.f32.mrf.mxu0  ;;  %v2126_v6 = vpop.f32.mrf.mxu1 }
 0x3aa   : > { %v2078_v7 = vadd.f32 %v2077_v33, %v3984_v50  ;;  %v2127_v29 = vadd.f32 %v2126_v6, %v3987_v51 }
 0x3ab   : > { %2377 = vst [vmem:[%s3995_s19 + $0x1c] sm:$0xff] %v2312_v18  ;;  %2885 = vmatmul.msk.bf16.gmra.mxu2 %vm1384_vm2, %v3854_v45  ;;  %2893 = vmatmul.msk.bf16.gmra.mxu3 %vm1384_vm2, %v3854_v45 }
 0x3ac   : > { %v2317_v10 = vpack.c.bf16 %v2127_v29, %v2078_v7  ;;  %2901 = vmatmul.msk.bf16.gmra.mxu0 %vm1384_vm2, %v3854_v45 }
 0x3ae   : > { %2382 = vst [vmem:[%s3995_s19 + $0x40] sm:$0xff] %v2317_v10  ;;  %v1979_v12 = vpop.f32.mrf.mxu2  ;;  %v2028_v47 = vpop.f32.mrf.mxu3 }
 0x3af   : > { %v1980_v13 = vadd.f32 %v1979_v12, %v4002_v22  ;;  %v2029_v48 = vadd.f32 %v2028_v47, %v4005_v53 }
 0x3b1   : > { %v2316_v15 = vpack.c.bf16 %v2029_v48, %v1980_v13  ;;  %v2079_v55 = vpop.f32.mrf.mxu0  ;;  %v2128_v14 = vpop.f32.mrf.mxu1 }
 0x3b2   : > { %v2080_v43 = vadd.f32 %v2079_v55, %v3984_v50  ;;  %v2129_v26 = vadd.f32 %v2128_v14, %v3987_v51 }
 0x3b3   : > { %2381 = vst [vmem:[%s3995_s19 + $0x38] sm:$0xff] %v2316_v15 }
 0x3b4   : > { %v2321_v23 = vpack.c.bf16 %v2129_v26, %v2080_v43 }
 0x3b6   : > { %2386 = vst [vmem:[%s3995_s19 + $0x5c] sm:$0xff] %v2321_v23  ;;  %v1981_v45 = vpop.f32.mrf.mxu2  ;;  %v2030_v30 = vpop.f32.mrf.mxu3 }
 0x3b7   : > { %v1982_v40 = vadd.f32 %v1981_v45, %v4002_v22  ;;  %v2031_v28 = vadd.f32 %v2030_v30, %v4005_v53 }
 0x3b9   : > { %v2320_v36 = vpack.c.bf16 %v2031_v28, %v1982_v40  ;;  %v2082_v24 = vpop.f32.mrf.mxu0  ;;  %v2131_v16 = vpop.f32.mrf.mxu1 }
 0x3ba   : > { %v2083_v56 = vadd.f32 %v2082_v24, %v3984_v50  ;;  %v2132_v31 = vadd.f32 %v2131_v16, %v3987_v51 }
 0x3bb   : > { %2385 = vst [vmem:[%s3995_s19 + $0x54] sm:$0xff] %v2320_v36  ;;  %2886 = vmatmul.msk.bf16.gmra.mxu2 %vm1384_vm2, %v3872_v57  ;;  %2894 = vmatmul.msk.bf16.gmra.mxu3 %vm1384_vm2, %v3872_v57 }
 0x3bc   : > { %v2325_v32 = vpack.c.bf16 %v2132_v31, %v2083_v56  ;;  %2902 = vmatmul.msk.bf16.gmra.mxu0 %vm1384_vm2, %v3872_v57 }
 0x3be   : > { %2390 = vst [vmem:[%s3995_s19 + $0x78] sm:$0xff] %v2325_v32  ;;  %v1984_v38 = vpop.f32.mrf.mxu2  ;;  %v2033_v39 = vpop.f32.mrf.mxu3 }
 0x3bf   : > { %v1985_v20 = vadd.f32 %v1984_v38, %v4002_v22  ;;  %v2034_v46 = vadd.f32 %v2033_v39, %v4005_v53 }
 0x3c1   : > { %v2324_v49 = vpack.c.bf16 %v2034_v46, %v1985_v20  ;;  %v2084_v58 = vpop.f32.mrf.mxu0  ;;  %v2133_v2 = vpop.f32.mrf.mxu1 }
 0x3c2   : > { %v2085_v27 = vadd.f32 %v2084_v58, %v3984_v50  ;;  %v2134_v54 = vadd.f32 %v2133_v2, %v3987_v51 }
 0x3c3   : > { %2389 = vst [vmem:[%s3995_s19 + $0x70] sm:$0xff] %v2324_v49 }
 0x3c4   : > { %v2329_v42 = vpack.c.bf16 %v2134_v54, %v2085_v27 }
 0x3c6   : > { %2394 = vst [vmem:[%s3995_s19 + $0x94] sm:$0xff] %v2329_v42  ;;  %v1986_v57 = vpop.f32.mrf.mxu2  ;;  %v2035_v11 = vpop.f32.mrf.mxu3 }
 0x3c7   : > { %v1987_v52 = vadd.f32 %v1986_v57, %v4002_v22  ;;  %v2036_v59 = vadd.f32 %v2035_v11, %v4005_v53 }
 0x3c9   : > { %v2328_v60 = vpack.c.bf16 %v2036_v59, %v1987_v52  ;;  %v2087_v61 = vpop.f32.mrf.mxu0  ;;  %v2136_v25 = vpop.f32.mrf.mxu1 }
 0x3ca   : > { %v2088_v62 = vadd.f32 %v2087_v61, %v3984_v50  ;;  %v2137_v0 = vadd.f32 %v2136_v25, %v3987_v51 }
 0x3cb   : > { %2393 = vst [vmem:[%s3995_s19 + $0x8c] sm:$0xff] %v2328_v60  ;;  %2887 = vmatmul.msk.bf16.gmra.mxu2 %vm1384_vm2, %v3896_v5  ;;  %2895 = vmatmul.msk.bf16.gmra.mxu3 %vm1384_vm2, %v3896_v5 }
 0x3cc   : > { %v2333_v4 = vpack.c.bf16 %v2137_v0, %v2088_v62  ;;  %2903 = vmatmul.msk.bf16.gmra.mxu0 %vm1384_vm2, %v3896_v5 }
 0x3ce   : > { %2398 = vst [vmem:[%s3995_s19 + $0xb0] sm:$0xff] %v2333_v4  ;;  %v1989_v34 = vpop.f32.mrf.mxu2  ;;  %v2038_v44 = vpop.f32.mrf.mxu3 }
 0x3cf   : > { %v1990_v9 = vadd.f32 %v1989_v34, %v4002_v22  ;;  %v2039_v1 = vadd.f32 %v2038_v44, %v4005_v53 }
 0x3d1   : > { %v2332_v19 = vpack.c.bf16 %v2039_v1, %v1990_v9  ;;  %v2089_v3 = vpop.f32.mrf.mxu0  ;;  %v2138_v8 = vpop.f32.mrf.mxu1 }
 0x3d2   : > { %v2090_v63 = vadd.f32 %v2089_v3, %v3984_v50  ;;  %v2139_v18 = vadd.f32 %v2138_v8, %v3987_v51 }
 0x3d3   : > { %2397 = vst [vmem:[%s3995_s19 + $0xa8] sm:$0xff] %v2332_v19 }
 0x3d4   : > { %v2337_v33 = vpack.c.bf16 %v2139_v18, %v2090_v63 }
 0x3d6   : > { %2402 = vst [vmem:[%s3995_s19 + $0xcc] sm:$0xff] %v2337_v33  ;;  %v1991_v5 = vpop.f32.mrf.mxu2  ;;  %v2040_v6 = vpop.f32.mrf.mxu3 }
 0x3d7   : > { %v1992_v7 = vadd.f32 %v1991_v5, %v4002_v22  ;;  %v2041_v29 = vadd.f32 %v2040_v6, %v4005_v53 }
 0x3d9   : > { %v2336_v10 = vpack.c.bf16 %v2041_v29, %v1992_v7  ;;  %v2092_v12 = vpop.f32.mrf.mxu0  ;;  %v2141_v47 = vpop.f32.mrf.mxu1 }
 0x3da   : > { %v2093_v13 = vadd.f32 %v2092_v12, %v3984_v50  ;;  %v2142_v48 = vadd.f32 %v2141_v47, %v3987_v51 }
 0x3db   : > { %2401 = vst [vmem:[%s3995_s19 + $0xc4] sm:$0xff] %v2336_v10  ;;  %2888 = vmatmul.msk.bf16.gmra.mxu2 %vm1384_vm2, %v3914_v35  ;;  %2896 = vmatmul.msk.bf16.gmra.mxu3 %vm1384_vm2, %v3914_v35 }
 0x3dc   : > { %v2341_v15 = vpack.c.bf16 %v2142_v48, %v2093_v13  ;;  %2904 = vmatmul.msk.bf16.gmra.mxu0 %vm1384_vm2, %v3914_v35 }
 0x3de   : > { %2406 = vst [vmem:[%s3995_s19 + $0xe8] sm:$0xff] %v2341_v15  ;;  %v1994_v55 = vpop.f32.mrf.mxu2  ;;  %v2043_v14 = vpop.f32.mrf.mxu3 }
 0x3df   : > { %v1995_v43 = vadd.f32 %v1994_v55, %v4002_v22  ;;  %v2044_v26 = vadd.f32 %v2043_v14, %v4005_v53 }
 0x3e1   : > { %v2340_v23 = vpack.c.bf16 %v2044_v26, %v1995_v43  ;;  %v2094_v45 = vpop.f32.mrf.mxu0  ;;  %v2143_v30 = vpop.f32.mrf.mxu1 }
 0x3e2   : > { %v2095_v40 = vadd.f32 %v2094_v45, %v3984_v50  ;;  %v2144_v28 = vadd.f32 %v2143_v30, %v3987_v51 }
 0x3e3   : > { %2405 = vst [vmem:[%s3995_s19 + $0xe0] sm:$0xff] %v2340_v23 }
 0x3e4   : > { %v2345_v36 = vpack.c.bf16 %v2144_v28, %v2095_v40 }
 0x3e6   : > { %2410 = vst [vmem:[%s3995_s19 + $0x104] sm:$0xff] %v2345_v36  ;;  %v1996_v35 = vpop.f32.mrf.mxu2  ;;  %v2045_v24 = vpop.f32.mrf.mxu3 }
 0x3e7   : > { %v1997_v16 = vadd.f32 %v1996_v35, %v4002_v22  ;;  %v2046_v56 = vadd.f32 %v2045_v24, %v4005_v53 }
 0x3e9   : > { %v2344_v31 = vpack.c.bf16 %v2046_v56, %v1997_v16  ;;  %v2097_v32 = vpop.f32.mrf.mxu0  ;;  %v2146_v38 = vpop.f32.mrf.mxu1  ;;  %v4143_v56 = vperm.slane %v3981_v21, 6 }
 0x3ea   : > { %v2098_v39 = vadd.f32 %v2097_v32, %v3984_v50  ;;  %v2147_v20 = vadd.f32 %v2146_v38, %v3987_v51 }
 0x3eb   : > { %2409 = vst [vmem:[%s3995_s19 + $0xfc] sm:$0xff] %v2344_v31  ;;  %2889 = vmatmul.msk.bf16.gmra.mxu2 %vm1384_vm2, %v3938_v17  ;;  %2897 = vmatmul.msk.bf16.gmra.mxu3 %vm1384_vm2, %v3938_v17 }
 0x3ec   : > { %v2349_v46 = vpack.c.bf16 %v2147_v20, %v2098_v39  ;;  %2905 = vmatmul.msk.bf16.gmra.mxu0 %vm1384_vm2, %v3938_v17  ;;  %v4153_v20 = vperm.slane %v3981_v21, 5 }
 0x3ee   : > { %2414 = vst [vmem:[%s3995_s19 + $0x120] sm:$0xff] %v2349_v46  ;;  %v1999_v49 = vpop.f32.mrf.mxu2  ;;  %v2048_v58 = vpop.f32.mrf.mxu3 }
 0x3ef   : > { %v2000_v2 = vadd.f32 %v1999_v49, %v4002_v22  ;;  %v2049_v27 = vadd.f32 %v2048_v58, %v4005_v53 }
 0x3f1   : > { %v2348_v54 = vpack.c.bf16 %v2049_v27, %v2000_v2  ;;  %v2099_v42 = vpop.f32.mrf.mxu0  ;;  %v2148_v57 = vpop.f32.mrf.mxu1 }
 0x3f2   : > { %v2100_v11 = vadd.f32 %v2099_v42, %v3984_v50  ;;  %v2149_v52 = vadd.f32 %v2148_v57, %v3987_v51 }
 0x3f3   : > { %2413 = vst [vmem:[%s3995_s19 + $0x118] sm:$0xff] %v2348_v54 }
 0x3f4   : > { %v2353_v59 = vpack.c.bf16 %v2149_v52, %v2100_v11 }
 0x3f6   : > { %2418 = vst [vmem:[%s3995_s19 + $0x13c] sm:$0xff] %v2353_v59  ;;  %v2001_v17 = vpop.f32.mrf.mxu2  ;;  %v2050_v60 = vpop.f32.mrf.mxu3 }
 0x3f7   : > { %v2002_v61 = vadd.f32 %v2001_v17, %v4002_v22  ;;  %v2051_v25 = vadd.f32 %v2050_v60, %v4005_v53 }
 0x3f9   : > { %v2352_v62 = vpack.c.bf16 %v2051_v25, %v2002_v61  ;;  %v2102_v0 = vpop.f32.mrf.mxu0  ;;  %v2151_v4 = vpop.f32.mrf.mxu1 }
 0x3fa   : > { %v2103_v34 = vadd.f32 %v2102_v0, %v3984_v50  ;;  %v2152_v44 = vadd.f32 %v2151_v4, %v3987_v51 }
 0x3fb   : > { %2417 = vst [vmem:[%s3995_s19 + $0x134] sm:$0xff] %v2352_v62  ;;  %2890 = vmatmul.msk.bf16.gmra.mxu2 %vm1384_vm2, %v3956_v41  ;;  %2898 = vmatmul.msk.bf16.gmra.mxu3 %vm1384_vm2, %v3956_v41 }
 0x3fc   : > { %v2357_v9 = vpack.c.bf16 %v2152_v44, %v2103_v34  ;;  %2906 = vmatmul.msk.bf16.gmra.mxu0 %vm1384_vm2, %v3956_v41 }
 0x3fe   : > { %2422 = vst [vmem:[%s3995_s19 + $0x158] sm:$0xff] %v2357_v9  ;;  %v2004_v1 = vpop.f32.mrf.mxu2  ;;  %v2053_v19 = vpop.f32.mrf.mxu3 }
 0x3ff   : > { %v2005_v3 = vadd.f32 %v2004_v1, %v4002_v22  ;;  %v2054_v8 = vadd.f32 %v2053_v19, %v4005_v53 }
 0x401   : > { %v2356_v63 = vpack.c.bf16 %v2054_v8, %v2005_v3  ;;  %v2104_v18 = vpop.f32.mrf.mxu0  ;;  %v2153_v33 = vpop.f32.mrf.mxu1 }
 0x402   : > { %v2105_v5 = vadd.f32 %v2104_v18, %v3984_v50  ;;  %v2154_v6 = vadd.f32 %v2153_v33, %v3987_v51 }
 0x403   : > { %2421 = vst [vmem:[%s3995_s19 + $0x150] sm:$0xff] %v2356_v63 }
 0x404   : > { %v2361_v7 = vpack.c.bf16 %v2154_v6, %v2105_v5 }
 0x406   : > { %2426 = vst [vmem:[%s3995_s19 + $0x174] sm:$0xff] %v2361_v7  ;;  %v2006_v41 = vpop.f32.mrf.mxu2  ;;  %v2055_v29 = vpop.f32.mrf.mxu3 }
 0x407   : > { %v2007_v10 = vadd.f32 %v2006_v41, %v4002_v22  ;;  %v2056_v12 = vadd.f32 %v2055_v29, %v4005_v53 }
 0x409   : > { %v2360_v47 = vpack.c.bf16 %v2056_v12, %v2007_v10  ;;  %v2107_v13 = vpop.f32.mrf.mxu0  ;;  %v2156_v48 = vpop.f32.mrf.mxu1 }
 0x40a   : > { %v2108_v15 = vadd.f32 %v2107_v13, %v3984_v50  ;;  %v2157_v55 = vadd.f32 %v2156_v48, %v3987_v51 }
 0x40b   : > { %2425 = vst [vmem:[%s3995_s19 + $0x16c] sm:$0xff] %v2360_v47  ;;  %2891 = vmatmul.msk.bf16.gmra.mxu2 %vm1384_vm2, %v3968_v37  ;;  %2899 = vmatmul.msk.bf16.gmra.mxu3 %vm1384_vm2, %v3968_v37 }
 0x40c   : > { %v2365_v14 = vpack.c.bf16 %v2157_v55, %v2108_v15  ;;  %2907 = vmatmul.msk.bf16.gmra.mxu0 %vm1384_vm2, %v3968_v37 }
 0x40e   : > { %2430 = vst [vmem:[%s3995_s19 + $0x190] sm:$0xff] %v2365_v14  ;;  %v2009_v43 = vpop.f32.mrf.mxu2  ;;  %v2058_v26 = vpop.f32.mrf.mxu3 }
 0x40f   : > { %v2010_v23 = vadd.f32 %v2009_v43, %v4002_v22  ;;  %v2059_v45 = vadd.f32 %v2058_v26, %v4005_v53 }
 0x411   : > { %v2364_v30 = vpack.c.bf16 %v2059_v45, %v2010_v23  ;;  %v2109_v40 = vpop.f32.mrf.mxu0  ;;  %v2158_v28 = vpop.f32.mrf.mxu1 }
 0x412   : > { %v2110_v36 = vadd.f32 %v2109_v40, %v3984_v50  ;;  %v2159_v35 = vadd.f32 %v2158_v28, %v3987_v51  ;;  %v4150_v51 = vperm.slane %v3981_v21, 4 }
 0x413   : > { %2429 = vst [vmem:[%s3995_s19 + $0x188] sm:$0xff] %v2364_v30 }
 0x414   : > { %v2369_v24 = vpack.c.bf16 %v2159_v35, %v2110_v36 }
 0x416   : > { %2434 = vst [vmem:[%s3995_s19 + $0x1ac] sm:$0xff] %v2369_v24  ;;  %v2011_v37 = vpop.f32.mrf.mxu2  ;;  %v2060_v16 = vpop.f32.mrf.mxu3 }
 0x417   : > { %v2012_v31 = vadd.f32 %v2011_v37, %v4002_v22  ;;  %v2061_v32 = vadd.f32 %v2060_v16, %v4005_v53 }
 0x419   : > { %v2368_v38 = vpack.c.bf16 %v2061_v32, %v2012_v31  ;;  %v2268_v39 = vpop.f32.mrf.mxu0 }
 0x41a   : > { %v2269_v50 = vadd.f32 %v2268_v39, %v4143_v56 }
 0x41b   : > { %2433 = vst [vmem:[%s3995_s19 + $0x1a4] sm:$0xff] %v2368_v38 }
 0x41c   : > { %v2311_v46 = vpack.c.bf16 %v2269_v50, %v2269_v50 }
 0x41e   : > { %2376 = vst.msk [vmem:[%s3995_s19 + $0x18] sm:$0xf] %vm2375_vm3, %v2311_v46  ;;  %v2170_v22 = vpop.f32.mrf.mxu2  ;;  %v2219_v49 = vpop.f32.mrf.mxu3 }
 0x41f   : > { %v2171_v53 = vadd.f32 %v2170_v22, %v4150_v51  ;;  %v2220_v58 = vadd.f32 %v2219_v49, %v4153_v20 }
 0x421   : > { %v2310_v2 = vpack.c.bf16 %v2220_v58, %v2171_v53  ;;  %v2270_v27 = vpop.f32.mrf.mxu0 }
 0x422   : > { %v2271_v54 = vadd.f32 %v2270_v27, %v4143_v56 }
 0x423   : > { %2374 = vst [vmem:[%s3995_s19 + $0x10] sm:$0xff] %v2310_v2 }
 0x424   : > { %v2315_v42 = vpack.c.bf16 %v2271_v54, %v2271_v54 }
 0x426   : > { %2380 = vst.msk [vmem:[%s3995_s19 + $0x34] sm:$0xf] %vm2375_vm3, %v2315_v42  ;;  %v2172_v21 = vpop.f32.mrf.mxu2  ;;  %v2221_v57 = vpop.f32.mrf.mxu3 }
 0x427   : > { %v2173_v11 = vadd.f32 %v2172_v21, %v4150_v51  ;;  %v2222_v52 = vadd.f32 %v2221_v57, %v4153_v20 }
 0x429   : > { %v2314_v59 = vpack.c.bf16 %v2222_v52, %v2173_v11  ;;  %v2273_v17 = vpop.f32.mrf.mxu0 }
 0x42a   : > { %v2274_v60 = vadd.f32 %v2273_v17, %v4143_v56 }
 0x42b   : > { %2379 = vst [vmem:[%s3995_s19 + $0x2c] sm:$0xff] %v2314_v59 }
 0x42c   : > { %v2319_v61 = vpack.c.bf16 %v2274_v60, %v2274_v60 }
 0x42e   : > { %2384 = vst.msk [vmem:[%s3995_s19 + $0x50] sm:$0xf] %vm2375_vm3, %v2319_v61  ;;  %v2175_v25 = vpop.f32.mrf.mxu2  ;;  %v2224_v62 = vpop.f32.mrf.mxu3 }
 0x42f   : > { %v2176_v0 = vadd.f32 %v2175_v25, %v4150_v51  ;;  %v2225_v4 = vadd.f32 %v2224_v62, %v4153_v20 }
 0x431   : > { %v2318_v34 = vpack.c.bf16 %v2225_v4, %v2176_v0  ;;  %v2275_v44 = vpop.f32.mrf.mxu0 }
 0x432   : > { %v2276_v9 = vadd.f32 %v2275_v44, %v4143_v56 }
 0x433   : > { %2383 = vst [vmem:[%s3995_s19 + $0x48] sm:$0xff] %v2318_v34 }
 0x434   : > { %v2323_v1 = vpack.c.bf16 %v2276_v9, %v2276_v9 }
 0x436   : > { %2388 = vst.msk [vmem:[%s3995_s19 + $0x6c] sm:$0xf] %vm2375_vm3, %v2323_v1  ;;  %v2177_v19 = vpop.f32.mrf.mxu2  ;;  %v2226_v3 = vpop.f32.mrf.mxu3 }
 0x437   : > { %v2178_v8 = vadd.f32 %v2177_v19, %v4150_v51  ;;  %v2227_v63 = vadd.f32 %v2226_v3, %v4153_v20 }
 0x439   : > { %v2322_v18 = vpack.c.bf16 %v2227_v63, %v2178_v8  ;;  %v2278_v33 = vpop.f32.mrf.mxu0 }
 0x43a   : > { %v2279_v5 = vadd.f32 %v2278_v33, %v4143_v56 }
 0x43b   : > { %2387 = vst [vmem:[%s3995_s19 + $0x64] sm:$0xff] %v2322_v18 }
 0x43c   : > { %v2327_v6 = vpack.c.bf16 %v2279_v5, %v2279_v5 }
 0x43e   : > { %2392 = vst.msk [vmem:[%s3995_s19 + $0x88] sm:$0xf] %vm2375_vm3, %v2327_v6  ;;  %v2180_v7 = vpop.f32.mrf.mxu2  ;;  %v2229_v41 = vpop.f32.mrf.mxu3 }
 0x43f   : > { %v2181_v29 = vadd.f32 %v2180_v7, %v4150_v51  ;;  %v2230_v10 = vadd.f32 %v2229_v41, %v4153_v20 }
 0x441   : > { %v2326_v12 = vpack.c.bf16 %v2230_v10, %v2181_v29  ;;  %v2280_v47 = vpop.f32.mrf.mxu0 }
 0x442   : > { %v2281_v13 = vadd.f32 %v2280_v47, %v4143_v56 }
 0x443   : > { %2391 = vst [vmem:[%s3995_s19 + $0x80] sm:$0xff] %v2326_v12 }
 0x444   : > { %v2331_v48 = vpack.c.bf16 %v2281_v13, %v2281_v13 }
 0x446   : > { %2396 = vst.msk [vmem:[%s3995_s19 + $0xa4] sm:$0xf] %vm2375_vm3, %v2331_v48  ;;  %v2182_v15 = vpop.f32.mrf.mxu2  ;;  %v2231_v55 = vpop.f32.mrf.mxu3 }
 0x447   : > { %v2183_v14 = vadd.f32 %v2182_v15, %v4150_v51  ;;  %v2232_v43 = vadd.f32 %v2231_v55, %v4153_v20 }
 0x449   : > { %v2330_v26 = vpack.c.bf16 %v2232_v43, %v2183_v14  ;;  %v2283_v23 = vpop.f32.mrf.mxu0 }
 0x44a   : > { %v2284_v45 = vadd.f32 %v2283_v23, %v4143_v56 }
 0x44b   : > { %2395 = vst [vmem:[%s3995_s19 + $0x9c] sm:$0xff] %v2330_v26 }
 0x44c   : > { %v2335_v30 = vpack.c.bf16 %v2284_v45, %v2284_v45 }
 0x44e   : > { %2400 = vst.msk [vmem:[%s3995_s19 + $0xc0] sm:$0xf] %vm2375_vm3, %v2335_v30  ;;  %v2185_v40 = vpop.f32.mrf.mxu2  ;;  %v2234_v28 = vpop.f32.mrf.mxu3 }
 0x44f   : > { %v2186_v36 = vadd.f32 %v2185_v40, %v4150_v51  ;;  %v2235_v35 = vadd.f32 %v2234_v28, %v4153_v20 }
 0x451   : > { %v2334_v24 = vpack.c.bf16 %v2235_v35, %v2186_v36  ;;  %v2285_v37 = vpop.f32.mrf.mxu0 }
 0x452   : > { %v2286_v16 = vadd.f32 %v2285_v37, %v4143_v56 }
 0x453   : > { %2399 = vst [vmem:[%s3995_s19 + $0xb8] sm:$0xff] %v2334_v24 }
 0x454   : > { %v2339_v31 = vpack.c.bf16 %v2286_v16, %v2286_v16 }
 0x456   : > { %2404 = vst.msk [vmem:[%s3995_s19 + $0xdc] sm:$0xf] %vm2375_vm3, %v2339_v31  ;;  %v2187_v32 = vpop.f32.mrf.mxu2  ;;  %v2236_v38 = vpop.f32.mrf.mxu3 }
 0x457   : > { %v2188_v39 = vadd.f32 %v2187_v32, %v4150_v51  ;;  %v2237_v50 = vadd.f32 %v2236_v38, %v4153_v20 }
 0x459   : > { %v2338_v46 = vpack.c.bf16 %v2237_v50, %v2188_v39  ;;  %v2288_v22 = vpop.f32.mrf.mxu0 }
 0x45a   : > { %v2289_v49 = vadd.f32 %v2288_v22, %v4143_v56 }
 0x45b   : > { %2403 = vst [vmem:[%s3995_s19 + $0xd4] sm:$0xff] %v2338_v46 }
 0x45c   : > { %v2343_v53 = vpack.c.bf16 %v2289_v49, %v2289_v49 }
 0x45e   : > { %2408 = vst.msk [vmem:[%s3995_s19 + $0xf8] sm:$0xf] %vm2375_vm3, %v2343_v53  ;;  %v2190_v58 = vpop.f32.mrf.mxu2  ;;  %v2239_v2 = vpop.f32.mrf.mxu3 }
 0x45f   : > { %v2191_v27 = vadd.f32 %v2190_v58, %v4150_v51  ;;  %v2240_v54 = vadd.f32 %v2239_v2, %v4153_v20 }
 0x461   : > { %v2342_v42 = vpack.c.bf16 %v2240_v54, %v2191_v27  ;;  %v2290_v21 = vpop.f32.mrf.mxu0 }
 0x462   : > { %v2291_v57 = vadd.f32 %v2290_v21, %v4143_v56 }
 0x463   : > { %2407 = vst [vmem:[%s3995_s19 + $0xf0] sm:$0xff] %v2342_v42 }
 0x464   : > { %v2347_v11 = vpack.c.bf16 %v2291_v57, %v2291_v57 }
 0x466   : > { %2412 = vst.msk [vmem:[%s3995_s19 + $0x114] sm:$0xf] %vm2375_vm3, %v2347_v11  ;;  %v2192_v52 = vpop.f32.mrf.mxu2  ;;  %v2241_v59 = vpop.f32.mrf.mxu3 }
 0x467   : > { %v2193_v17 = vadd.f32 %v2192_v52, %v4150_v51  ;;  %v2242_v60 = vadd.f32 %v2241_v59, %v4153_v20 }
 0x469   : > { %v2346_v61 = vpack.c.bf16 %v2242_v60, %v2193_v17  ;;  %v2293_v25 = vpop.f32.mrf.mxu0 }
 0x46a   : > { %v2294_v62 = vadd.f32 %v2293_v25, %v4143_v56 }
 0x46b   : > { %2411 = vst [vmem:[%s3995_s19 + $0x10c] sm:$0xff] %v2346_v61 }
 0x46c   : > { %v2351_v0 = vpack.c.bf16 %v2294_v62, %v2294_v62 }
 0x46e   : > { %2416 = vst.msk [vmem:[%s3995_s19 + $0x130] sm:$0xf] %vm2375_vm3, %v2351_v0  ;;  %v2195_v4 = vpop.f32.mrf.mxu2  ;;  %v2244_v34 = vpop.f32.mrf.mxu3 }
 0x46f   : > { %v2196_v44 = vadd.f32 %v2195_v4, %v4150_v51  ;;  %v2245_v9 = vadd.f32 %v2244_v34, %v4153_v20 }
 0x471   : > { %v2350_v1 = vpack.c.bf16 %v2245_v9, %v2196_v44  ;;  %v2295_v19 = vpop.f32.mrf.mxu0 }
 0x472   : > { %v2296_v3 = vadd.f32 %v2295_v19, %v4143_v56 }
 0x473   : > { %2415 = vst [vmem:[%s3995_s19 + $0x128] sm:$0xff] %v2350_v1 }
 0x474   : > { %v2355_v8 = vpack.c.bf16 %v2296_v3, %v2296_v3 }
 0x476   : > { %2420 = vst.msk [vmem:[%s3995_s19 + $0x14c] sm:$0xf] %vm2375_vm3, %v2355_v8  ;;  %v2197_v63 = vpop.f32.mrf.mxu2  ;;  %v2246_v18 = vpop.f32.mrf.mxu3 }
 0x477   : > { %v2198_v33 = vadd.f32 %v2197_v63, %v4150_v51  ;;  %v2247_v5 = vadd.f32 %v2246_v18, %v4153_v20 }
 0x479   : > { %v2354_v6 = vpack.c.bf16 %v2247_v5, %v2198_v33  ;;  %v2298_v7 = vpop.f32.mrf.mxu0 }
 0x47a   : > { %v2299_v41 = vadd.f32 %v2298_v7, %v4143_v56 }
 0x47b   : > { %2419 = vst [vmem:[%s3995_s19 + $0x144] sm:$0xff] %v2354_v6 }
 0x47c   : > { %v2359_v29 = vpack.c.bf16 %v2299_v41, %v2299_v41 }
 0x47e   : > { %2424 = vst.msk [vmem:[%s3995_s19 + $0x168] sm:$0xf] %vm2375_vm3, %v2359_v29  ;;  %v2200_v10 = vpop.f32.mrf.mxu2  ;;  %v2249_v12 = vpop.f32.mrf.mxu3 }
 0x47f   : > { %v2201_v47 = vadd.f32 %v2200_v10, %v4150_v51  ;;  %v2250_v13 = vadd.f32 %v2249_v12, %v4153_v20 }
 0x481   : > { %v2358_v48 = vpack.c.bf16 %v2250_v13, %v2201_v47  ;;  %v2300_v15 = vpop.f32.mrf.mxu0 }
 0x482   : > { %v2301_v55 = vadd.f32 %v2300_v15, %v4143_v56 }
 0x483   : > { %2423 = vst [vmem:[%s3995_s19 + $0x160] sm:$0xff] %v2358_v48 }
 0x484   : > { %v2363_v14 = vpack.c.bf16 %v2301_v55, %v2301_v55 }
 0x486   : > { %2428 = vst.msk [vmem:[%s3995_s19 + $0x184] sm:$0xf] %vm2375_vm3, %v2363_v14  ;;  %v2202_v43 = vpop.f32.mrf.mxu2  ;;  %v2251_v26 = vpop.f32.mrf.mxu3 }
 0x487   : > { %v2203_v23 = vadd.f32 %v2202_v43, %v4150_v51  ;;  %v2252_v45 = vadd.f32 %v2251_v26, %v4153_v20 }
 0x489   : > { %v2362_v30 = vpack.c.bf16 %v2252_v45, %v2203_v23  ;;  %v2303_v40 = vpop.f32.mrf.mxu0 }
 0x48a   : > { %v2304_v28 = vadd.f32 %v2303_v40, %v4143_v56 }
 0x48b   : > { %2427 = vst [vmem:[%s3995_s19 + $0x17c] sm:$0xff] %v2362_v30 }
 0x48c   : > { %v2367_v36 = vpack.c.bf16 %v2304_v28, %v2304_v28 }
 0x48e   : > { %2432 = vst.msk [vmem:[%s3995_s19 + $0x1a0] sm:$0xf] %vm2375_vm3, %v2367_v36  ;;  %v2205_v35 = vpop.f32.mrf.mxu2  ;;  %v2254_v24 = vpop.f32.mrf.mxu3 }
 0x48f   : > { %v2206_v37 = vadd.f32 %v2205_v35, %v4150_v51  ;;  %v2255_v16 = vadd.f32 %v2254_v24, %v4153_v20 }
 0x491   : > { %v2366_v31 = vpack.c.bf16 %v2255_v16, %v2206_v37  ;;  %v2305_v32 = vpop.f32.mrf.mxu0 }
 0x492   : > { %v2306_v38 = vadd.f32 %v2305_v32, %v4143_v56 }
 0x493   : > { %2431 = vst [vmem:[%s3995_s19 + $0x198] sm:$0xff] %v2366_v31 }
 0x494   : > { %v2371_v39 = vpack.c.bf16 %v2306_v38, %v2306_v38 }
 0x496   : > { %2436 = vst.msk [vmem:[%s3995_s19 + $0x1bc] sm:$0xf] %vm2375_vm3, %v2371_v39  ;;  %v2207_v50 = vpop.f32.mrf.mxu2  ;;  %v2256_v46 = vpop.f32.mrf.mxu3 }
 0x497   : > { %v2208_v22 = vadd.f32 %v2207_v50, %v4150_v51  ;;  %v2257_v49 = vadd.f32 %v2256_v46, %v4153_v20 }
 0x499   : > { %v2370_v53 = vpack.c.bf16 %v2257_v49, %v2208_v22 }
 0x49b   : > { %2435 = vst [vmem:[%s3995_s19 + $0x1b4] sm:$0xff] %v2370_v53 }
 0x49c PF: > { %s21_s17 = sadd.s32 1, %s3161_s17  }
 0x49d   : > { %p18_p4 = scmp.ge.s32.totalorder %s21_s17, 4  }
 0x49f   :  { %20 = sbr.rel (!%p18_p4) target bundleno = 1 (0x1), region = 94 }

</bundles_post_ra>
